<compile_context>
chip_gen: v7x
topology: tpu7x:2x2x1
jax: 0.10.0
libtpu: 0.0.40
codegen_flags: <defaults>
</compile_context>

<pallas_src>
import jax
import jax.numpy as jnp
import numpy as np
from jax.experimental import pallas as pl
from jax.experimental.pallas import tpu as pltpu


# ----------------------------------------------------------------------------
# Fused Pallas kernel (embedding -> wave-pipelined LSTM stack -> decoder)
# ----------------------------------------------------------------------------
def _make_fused_rnn_kernel(num_layers, S, B, H, V):
    """Ref order (all whole-array VMEM residents):

    inputs : ids (S*B, 1) int32,
             emb (V, E) f32,
             h0 (L, B, H) f32, c0 (L, B, H) f32,
             per layer l: w_ih_t (IN_l, 4H) bf16, w_hh_t (H, 4H) bf16,
                          b (1, 4H) f32 (= b_ih + b_hh),
             w_dec_t (H, Tp) bf16 (zero-padded to Tp lanes), b_dec (1, Tp) f32
    outputs: dec (S*B, Tp) f32, h_n (L, B, H) f32, c_n (L, B, H) f32
    scratch: ys (S*B, H) f32   -- top-layer output sequence
    """

    def kernel(*refs):
        ids_ref, emb_ref, h0_ref, c0_ref = refs[:4]
        layer_refs = refs[4:4 + 3 * num_layers]
        wdec_ref, bdec_ref = refs[4 + 3 * num_layers:6 + 3 * num_layers]
        dec_ref, hn_ref, cn_ref = refs[6 + 3 * num_layers:9 + 3 * num_layers]
        ys_ref = refs[9 + 3 * num_layers]

        SB = S * B

        # ---- Embedding lookup as an exact f32 one-hot matmul. --------------
        # TODO(synk): at realistic vocab sizes, move `emb` to memory_space=
        # pl.ANY (HBM) and DMA-gather rows via scalar-prefetched ids instead
        # of keeping the whole table VMEM-resident with an O(SB*V*E) matmul.
        ids = ids_ref[...]                                        # (SB, 1) i32
        vocab = jax.lax.broadcasted_iota(jnp.int32, (SB, V), 1)   # (SB, V)
        onehot = jnp.where(vocab == ids, 1.0, 0.0).astype(jnp.float32)
        x_emb = jnp.dot(onehot, emb_ref[...],
                        preferred_element_type=jnp.float32)       # (SB, E) f32

        # ---- Weights: loaded once, bf16 MXU operands, f32 biases. ----------
        w_ih = [layer_refs[3 * l][...] for l in range(num_layers)]      # bf16
        w_hh = [layer_refs[3 * l + 1][...] for l in range(num_layers)]  # bf16
        bias = [layer_refs[3 * l + 2][...] for l in range(num_layers)]  # f32

        # Layer-0 input projection + bias for ALL timesteps in one MXU pass
        # (hoisted off the recurrent critical path).
        xw0 = jnp.dot(x_emb.astype(jnp.bfloat16), w_ih[0],
                      preferred_element_type=jnp.float32) + bias[0]  # (SB, 4H)

        h = [h0_ref[l] for l in range(num_layers)]   # (B, H) f32 each
        c = [c0_ref[l] for l in range(num_layers)]

        def lstm_cell(g, c_prev):
            # Full-width EUP activations on the packed (B, 4H) gate vreg,
            # then slice out the gates (PyTorch order: i, f, g, o).
            sg = jax.nn.sigmoid(g)
            tg = jnp.tanh(g)
            i_g = sg[:, 0 * H:1 * H]
            f_g = sg[:, 1 * H:2 * H]
            g_g = tg[:, 2 * H:3 * H]
            o_g = sg[:, 3 * H:4 * H]
            c_new = f_g * c_prev + i_g * g_g
            h_new = o_g * jnp.tanh(c_new)
            return h_new, c_new

        # ---- Wave-pipelined recurrence: time outermost, layers inner. ------
        # Layer l at step t depends only on (layer l-1, step t) and
        # (layer l, step t-1)  =>  critical path length S + L - 1.
        # TODO(synk): optionally keep W_hh resident in the MXU staging regs
        # across the time loop via pltpu.matmul_push_rhs/_acc_lhs/_pop.
        for t in range(S):                    # fully unrolled (small S)
            y = None
            for l in range(num_layers):
                if l == 0:
                    g = xw0[t * B:(t + 1) * B, :] + jnp.dot(
                        h[0].astype(jnp.bfloat16), w_hh[0],
                        preferred_element_type=jnp.float32)
                else:
                    g = (jnp.dot(y.astype(jnp.bfloat16), w_ih[l],
                                 preferred_element_type=jnp.float32)
                         + jnp.dot(h[l].astype(jnp.bfloat16), w_hh[l],
                                   preferred_element_type=jnp.float32)
                         + bias[l])
                h[l], c[l] = lstm_cell(g, c[l])
                y = h[l]
            # Top-layer output into VMEM scratch (bounds live ranges; no
            # growing Python list + concatenate).
            ys_ref[pl.ds(t * B, B), :] = y

        # Final states, written exactly once per layer.
        for l in range(num_layers):
            hn_ref[l] = h[l].astype(hn_ref.dtype)
            cn_ref[l] = c[l].astype(cn_ref.dtype)
        # TODO(synk): lane-dense (1, L*B*H) repack of h_n/c_n skipped -- the
        # required relayout costs more than one tiny masked store here.

        # ---- Decoder: one MXU pass; Tp is a multiple of 128, so the output
        # store is fully lane-dense (unmasked vst). --------------------------
        dec_ref[...] = (jnp.dot(ys_ref[...].astype(jnp.bfloat16), wdec_ref[...],
                                preferred_element_type=jnp.float32)
                        + bdec_ref[...]).astype(dec_ref.dtype)

    return kernel


# ----------------------------------------------------------------------------
# Wrapper
# ----------------------------------------------------------------------------
def rnn_model_forward(params, input_ids, hidden):
    """Forward pass of RNNModel (rnn_type='LSTM').

    input_ids : (S, B) int32 token ids (time-major, like nn.LSTM default)
    hidden    : (h0, c0) each (layers, B, H)
    returns (decoded (S, B, token), (h_n, c_n))
    """
    h0, c0 = hidden
    S, B = input_ids.shape
    L, _, H = h0.shape
    V, _E = params["emb"].shape
    T = params["w_dec_t"].shape[1]
    SB = S * B
    Tp = ((T + 127) // 128) * 128          # lane-dense decoder output width

    ids2d = input_ids.reshape(SB, 1).astype(jnp.int32)

    # bf16 MXU weights (halves weight VMEM); biases stay f32; emb stays f32
    # so the in-kernel one-hot gather is exact.
    operands = [ids2d, params["emb"].astype(jnp.float32), h0, c0]
    for lp in params["lstm"]:
        operands += [lp["w_ih_t"].astype(jnp.bfloat16),
                     lp["w_hh_t"].astype(jnp.bfloat16),
                     lp["b"]]
    w_dec_p = jnp.zeros((H, Tp), jnp.bfloat16).at[:, :T].set(
        params["w_dec_t"].astype(jnp.bfloat16))
    b_dec_p = jnp.zeros((1, Tp), jnp.float32).at[:, :T].set(params["b_dec"])
    operands += [w_dec_p, b_dec_p]

    out_shapes = (jax.ShapeDtypeStruct((SB, Tp), jnp.float32),
                  jax.ShapeDtypeStruct((L, B, H), jnp.float32),
                  jax.ShapeDtypeStruct((L, B, H), jnp.float32))

    # Explicit VMEM budget: whole-array residency of inputs + outputs +
    # scratch with generous headroom, capped below v7x's 64 MiB physical.
    def _nbytes(shape, dtype):
        return int(np.prod(shape)) * np.dtype(dtype).itemsize

    resident = sum(_nbytes(op.shape, op.dtype) for op in operands)
    resident += sum(_nbytes(o.shape, o.dtype) for o in out_shapes)
    resident += _nbytes((SB, H), jnp.float32)          # ys scratch
    vmem_limit = int(min(64 * 1024 * 1024,
                         max(8 * 1024 * 1024, 8 * resident)))

    kernel = _make_fused_rnn_kernel(L, S, B, H, V)
    vmem = pl.BlockSpec(memory_space=pltpu.MemorySpace.VMEM)

    # TODO(synk): for non-toy batch on v7x, add a grid axis over batch with
    # dimension_semantics=("parallel",) to shard across the 2 TensorCores.
    dec, h_n, c_n = pl.pallas_call(
        kernel,
        out_shape=out_shapes,
        in_specs=[vmem] * len(operands),
        out_specs=(vmem, vmem, vmem),
        scratch_shapes=[pltpu.VMEM((SB, H), jnp.float32)],
        compiler_params=pltpu.CompilerParams(vmem_limit_bytes=vmem_limit),
    )(*operands)

    # Original module does decoded.view(S, B, hidden_size); valid because
    # token_size == hidden_size here.  Slice off the lane padding and reshape
    # to token_size (the shape-correct generalization).
    decoded = dec[:, :T].reshape(S, B, T)
    return decoded, (h_n, c_n)


# ----------------------------------------------------------------------------
# Pure-JAX reference (dot_dtype=bf16 mirrors the kernel's MXU precision)
# ----------------------------------------------------------------------------
def _ref_forward(params, input_ids, hidden, dot_dtype=jnp.float32):
    h0_all, c0_all = hidden
    H = h0_all.shape[-1]
    x = params["emb"][input_ids].astype(jnp.float32)          # (S, B, E)
    h_fs, c_fs = [], []
    for l, lp in enumerate(params["lstm"]):
        wih = lp["w_ih_t"].astype(dot_dtype)
        whh = lp["w_hh_t"].astype(dot_dtype)
        b = lp["b"]

        def step(carry, xt, wih=wih, whh=whh, b=b):
            h, c = carry
            g = (jnp.dot(xt.astype(dot_dtype), wih,
                         preferred_element_type=jnp.float32)
                 + jnp.dot(h.astype(dot_dtype), whh,
                           preferred_element_type=jnp.float32) + b)
            i = jax.nn.sigmoid(g[:, :H])
            f = jax.nn.sigmoid(g[:, H:2 * H])
            gg = jnp.tanh(g[:, 2 * H:3 * H])
            o = jax.nn.sigmoid(g[:, 3 * H:])
            c2 = f * c + i * gg
            h2 = o * jnp.tanh(c2)
            return (h2, c2), h2

        (hn, cn), ys = jax.lax.scan(step, (h0_all[l], c0_all[l]), x)
        x = ys
        h_fs.append(hn[None])
        c_fs.append(cn[None])
    S, B, _ = x.shape
    T = params["w_dec_t"].shape[1]
    dec = (jnp.dot(x.reshape(S * B, H).astype(dot_dtype),
                   params["w_dec_t"].astype(dot_dtype),
                   preferred_element_type=jnp.float32) + params["b_dec"])
    return dec.reshape(S, B, T), (jnp.concatenate(h_fs, 0),
                                  jnp.concatenate(c_fs, 0))


# ----------------------------------------------------------------------------
# Parameter construction (deterministic, synthetic)
# ----------------------------------------------------------------------------
def init_params(key, token_size, embedding_size, hidden_size, layers_size):
    keys = jax.random.split(key, 2 + layers_size)
    k_emb, k_dec = keys[0], keys[1]
    scale = 1.0 / np.sqrt(hidden_size)

    emb = jax.random.normal(k_emb, (token_size, embedding_size), jnp.float32)

    lstm_layers = []
    for l in range(layers_size):
        in_dim = embedding_size if l == 0 else hidden_size
        kw1, kw2, kb1, kb2, _ = jax.random.split(keys[2 + l], 5)
        w_ih = jax.random.uniform(kw1, (4 * hidden_size, in_dim),
                                  jnp.float32, -scale, scale)
        w_hh = jax.random.uniform(kw2, (4 * hidden_size, hidden_size),
                                  jnp.float32, -scale, scale)
        b_ih = jax.random.uniform(kb1, (4 * hidden_size,),
                                  jnp.float32, -scale, scale)
        b_hh = jax.random.uniform(kb2, (4 * hidden_size,),
                                  jnp.float32, -scale, scale)
        lstm_layers.append({
            "w_ih_t": w_ih.T,                       # (in, 4H)
            "w_hh_t": w_hh.T,                       # (H, 4H)
            "b": (b_ih + b_hh)[None, :],            # (1, 4H)
        })

    kwd, kbd = jax.random.split(k_dec)
    w_dec = jax.random.uniform(kwd, (token_size, hidden_size),
                               jnp.float32, -scale, scale)
    b_dec = jax.random.uniform(kbd, (token_size,), jnp.float32, -scale, scale)

    return {"emb": emb, "lstm": lstm_layers,
            "w_dec_t": w_dec.T, "b_dec": b_dec[None, :]}


# ----------------------------------------------------------------------------
# Demo
# ----------------------------------------------------------------------------
if __name__ == "__main__":
    token_size = 32          # == hidden_size so the original final view is valid
    embedding_size = 16
    hidden_size = 32
    layers_size = 2
    seq_len = 8
    batch = 2

    key = jax.random.PRNGKey(0)
    k_params, k_ids = jax.random.split(key)
    params = init_params(k_params, token_size, embedding_size,
                         hidden_size, layers_size)

    input_ids = jax.random.randint(k_ids, (seq_len, batch), 0, token_size,
                                   dtype=jnp.int32)
    # init_hidden(batch) for LSTM:
    h0 = jnp.zeros((layers_size, batch, hidden_size), jnp.float32)
    c0 = jnp.zeros((layers_size, batch, hidden_size), jnp.float32)

    decoded, (h_n, c_n) = rnn_model_forward(params, input_ids, (h0, c0))
    jax.block_until_ready(decoded)
    jax.block_until_ready(h_n)
    jax.block_until_ready(c_n)

    # Tight check: same math with bf16 MXU inputs (what the kernel computes).
    bf_dec, (bf_h, bf_c) = _ref_forward(params, input_ids, (h0, c0),
                                        dot_dtype=jnp.bfloat16)
    np.testing.assert_allclose(np.asarray(decoded), np.asarray(bf_dec),
                               rtol=2e-3, atol=2e-3)
    np.testing.assert_allclose(np.asarray(h_n), np.asarray(bf_h),
                               rtol=2e-3, atol=2e-3)
    np.testing.assert_allclose(np.asarray(c_n), np.asarray(bf_c),
                               rtol=2e-3, atol=2e-3)

    # Loose check against the exact-f32 (PyTorch-semantics) reference; bf16
    # MXU inputs require looser tolerances (per the performance review).
    f_dec, (f_h, f_c) = _ref_forward(params, input_ids, (h0, c0),
                                     dot_dtype=jnp.float32)
    np.testing.assert_allclose(np.asarray(decoded), np.asarray(f_dec),
                               rtol=5e-2, atol=5e-2)
    np.testing.assert_allclose(np.asarray(h_n), np.asarray(f_h),
                               rtol=5e-2, atol=5e-2)
    np.testing.assert_allclose(np.asarray(c_n), np.asarray(f_c),
                               rtol=5e-2, atol=5e-2)

    print("KERNEL_OK")
</pallas_src>

<mosaic_0001>
module attributes {stable_mosaic.version = 11 : i64} {
  func.func @kernel(%arg0: memref<16x1xi32, #tpu.memory_space<vmem>>, %arg1: memref<32x16xf32, #tpu.memory_space<vmem>>, %arg2: memref<2x2x32xf32, #tpu.memory_space<vmem>>, %arg3: memref<2x2x32xf32, #tpu.memory_space<vmem>>, %arg4: memref<16x128xbf16, #tpu.memory_space<vmem>>, %arg5: memref<32x128xbf16, #tpu.memory_space<vmem>>, %arg6: memref<1x128xf32, #tpu.memory_space<vmem>>, %arg7: memref<32x128xbf16, #tpu.memory_space<vmem>>, %arg8: memref<32x128xbf16, #tpu.memory_space<vmem>>, %arg9: memref<1x128xf32, #tpu.memory_space<vmem>>, %arg10: memref<32x128xbf16, #tpu.memory_space<vmem>>, %arg11: memref<1x128xf32, #tpu.memory_space<vmem>>, %arg12: memref<16x128xf32, #tpu.memory_space<vmem>>, %arg13: memref<2x2x32xf32, #tpu.memory_space<vmem>>, %arg14: memref<2x2x32xf32, #tpu.memory_space<vmem>>, %arg15: memref<16x32xf32, #tpu.memory_space<vmem>>) attributes {dimension_semantics = [], scalar_prefetch = 0 : i64, scratch_operands = 1 : i64, tpu.core_type = #tpu.core_type<tc>} {
    %c0 = arith.constant 0 : index
    %c0_0 = arith.constant 0 : index
    %0 = vector.load %arg0[%c0, %c0_0] : memref<16x1xi32, #tpu.memory_space<vmem>>, vector<16x1xi32>
    %1 = tpu.iota {dimensions = array<i32: 1>} : vector<16x32xi32>
    %2 = vector.broadcast %0 : vector<16x1xi32> to vector<16x32xi32>
    %3 = arith.cmpi eq, %1, %2 : vector<16x32xi32>
    %cst = arith.constant 1.000000e+00 : f32
    %cst_1 = arith.constant 0.000000e+00 : f32
    %4 = vector.broadcast %cst : f32 to vector<16x32xf32>
    %5 = vector.broadcast %cst_1 : f32 to vector<16x32xf32>
    %6 = arith.select %3, %4, %5 : vector<16x32xi1>, vector<16x32xf32>
    %c0_2 = arith.constant 0 : index
    %c0_3 = arith.constant 0 : index
    %7 = vector.load %arg1[%c0_2, %c0_3] : memref<32x16xf32, #tpu.memory_space<vmem>>, vector<32x16xf32>
    %cst_4 = arith.constant dense<0.000000e+00> : vector<16x16xf32>
    %8 = tpu.matmul %6, %7, %cst_4 {dimension_numbers = #tpu.dot_dimension_numbers<[1], [0], [0], [1], [0, 0, 1, 1], [], []>} : vector<16x32xf32>, vector<32x16xf32>, vector<16x16xf32> -> vector<16x16xf32>
    %c0_5 = arith.constant 0 : index
    %c0_6 = arith.constant 0 : index
    %9 = vector.load %arg4[%c0_5, %c0_6] : memref<16x128xbf16, #tpu.memory_space<vmem>>, vector<16x128xbf16>
    %c0_7 = arith.constant 0 : index
    %c0_8 = arith.constant 0 : index
    %10 = vector.load %arg7[%c0_7, %c0_8] : memref<32x128xbf16, #tpu.memory_space<vmem>>, vector<32x128xbf16>
    %c0_9 = arith.constant 0 : index
    %c0_10 = arith.constant 0 : index
    %11 = vector.load %arg5[%c0_9, %c0_10] : memref<32x128xbf16, #tpu.memory_space<vmem>>, vector<32x128xbf16>
    %c0_11 = arith.constant 0 : index
    %c0_12 = arith.constant 0 : index
    %12 = vector.load %arg8[%c0_11, %c0_12] : memref<32x128xbf16, #tpu.memory_space<vmem>>, vector<32x128xbf16>
    %c0_13 = arith.constant 0 : index
    %c0_14 = arith.constant 0 : index
    %13 = vector.load %arg6[%c0_13, %c0_14] : memref<1x128xf32, #tpu.memory_space<vmem>>, vector<1x128xf32>
    %c0_15 = arith.constant 0 : index
    %c0_16 = arith.constant 0 : index
    %14 = vector.load %arg9[%c0_15, %c0_16] : memref<1x128xf32, #tpu.memory_space<vmem>>, vector<1x128xf32>
    %15 = arith.truncf %8 : vector<16x16xf32> to vector<16x16xbf16>
    %cst_17 = arith.constant dense<0.000000e+00> : vector<16x128xf32>
    %16 = tpu.matmul %15, %9, %cst_17 {dimension_numbers = #tpu.dot_dimension_numbers<[1], [0], [0], [1], [0, 0, 1, 1], [], []>} : vector<16x16xbf16>, vector<16x128xbf16>, vector<16x128xf32> -> vector<16x128xf32>
    %17 = vector.broadcast %13 : vector<1x128xf32> to vector<16x128xf32>
    %18 = arith.addf %16, %17 : vector<16x128xf32>
    %c0_18 = arith.constant 0 : index
    %c0_19 = arith.constant 0 : index
    %c0_20 = arith.constant 0 : index
    %19 = vector.load %arg2[%c0_18, %c0_19, %c0_20] : memref<2x2x32xf32, #tpu.memory_space<vmem>>, vector<1x2x32xf32>
    %20 = vector.shape_cast %19 : vector<1x2x32xf32> to vector<2x32xf32>
    %c1 = arith.constant 1 : index
    %c0_21 = arith.constant 0 : index
    %c0_22 = arith.constant 0 : index
    %21 = vector.load %arg2[%c1, %c0_21, %c0_22] : memref<2x2x32xf32, #tpu.memory_space<vmem>>, vector<1x2x32xf32>
    %22 = vector.shape_cast %21 : vector<1x2x32xf32> to vector<2x32xf32>
    %c0_23 = arith.constant 0 : index
    %c0_24 = arith.constant 0 : index
    %c0_25 = arith.constant 0 : index
    %23 = vector.load %arg3[%c0_23, %c0_24, %c0_25] : memref<2x2x32xf32, #tpu.memory_space<vmem>>, vector<1x2x32xf32>
    %24 = vector.shape_cast %23 : vector<1x2x32xf32> to vector<2x32xf32>
    %c1_26 = arith.constant 1 : index
    %c0_27 = arith.constant 0 : index
    %c0_28 = arith.constant 0 : index
    %25 = vector.load %arg3[%c1_26, %c0_27, %c0_28] : memref<2x2x32xf32, #tpu.memory_space<vmem>>, vector<1x2x32xf32>
    %26 = vector.shape_cast %25 : vector<1x2x32xf32> to vector<2x32xf32>
    %27 = vector.extract_strided_slice %18 {offsets = [0, 0], sizes = [2, 128], strides = [1, 1]} : vector<16x128xf32> to vector<2x128xf32>
    %28 = arith.truncf %20 : vector<2x32xf32> to vector<2x32xbf16>
    %cst_29 = arith.constant dense<0.000000e+00> : vector<2x128xf32>
    %29 = tpu.matmul %28, %11, %cst_29 {dimension_numbers = #tpu.dot_dimension_numbers<[1], [0], [0], [1], [0, 0, 1, 1], [], []>} : vector<2x32xbf16>, vector<32x128xbf16>, vector<2x128xf32> -> vector<2x128xf32>
    %30 = arith.addf %27, %29 : vector<2x128xf32>
    %31 = arith.negf %30 : vector<2x128xf32>
    %32 = math.exp %31 : vector<2x128xf32>
    %cst_30 = arith.constant 1.000000e+00 : f32
    %33 = vector.broadcast %cst_30 : f32 to vector<2x128xf32>
    %34 = arith.addf %33, %32 : vector<2x128xf32>
    %35 = arith.divf %33, %34 : vector<2x128xf32>
    %36 = math.tanh %30 : vector<2x128xf32>
    %37 = vector.extract_strided_slice %35 {offsets = [0, 0], sizes = [2, 32], strides = [1, 1]} : vector<2x128xf32> to vector<2x32xf32>
    %38 = vector.extract_strided_slice %35 {offsets = [0, 32], sizes = [2, 32], strides = [1, 1]} : vector<2x128xf32> to vector<2x32xf32>
    %39 = vector.extract_strided_slice %36 {offsets = [0, 64], sizes = [2, 32], strides = [1, 1]} : vector<2x128xf32> to vector<2x32xf32>
    %40 = vector.extract_strided_slice %35 {offsets = [0, 96], sizes = [2, 32], strides = [1, 1]} : vector<2x128xf32> to vector<2x32xf32>
    %41 = arith.mulf %38, %24 : vector<2x32xf32>
    %42 = arith.mulf %37, %39 : vector<2x32xf32>
    %43 = arith.addf %41, %42 : vector<2x32xf32>
    %44 = math.tanh %43 : vector<2x32xf32>
    %45 = arith.mulf %40, %44 : vector<2x32xf32>
    %46 = arith.truncf %45 : vector<2x32xf32> to vector<2x32xbf16>
    %cst_31 = arith.constant dense<0.000000e+00> : vector<2x128xf32>
    %47 = tpu.matmul %46, %10, %cst_31 {dimension_numbers = #tpu.dot_dimension_numbers<[1], [0], [0], [1], [0, 0, 1, 1], [], []>} : vector<2x32xbf16>, vector<32x128xbf16>, vector<2x128xf32> -> vector<2x128xf32>
    %48 = arith.truncf %22 : vector<2x32xf32> to vector<2x32xbf16>
    %cst_32 = arith.constant dense<0.000000e+00> : vector<2x128xf32>
    %49 = tpu.matmul %48, %12, %cst_32 {dimension_numbers = #tpu.dot_dimension_numbers<[1], [0], [0], [1], [0, 0, 1, 1], [], []>} : vector<2x32xbf16>, vector<32x128xbf16>, vector<2x128xf32> -> vector<2x128xf32>
    %50 = arith.addf %47, %49 : vector<2x128xf32>
    %51 = vector.broadcast %14 : vector<1x128xf32> to vector<2x128xf32>
    %52 = arith.addf %50, %51 : vector<2x128xf32>
    %53 = arith.negf %52 : vector<2x128xf32>
    %54 = math.exp %53 : vector<2x128xf32>
    %cst_33 = arith.constant 1.000000e+00 : f32
    %55 = vector.broadcast %cst_33 : f32 to vector<2x128xf32>
    %56 = arith.addf %55, %54 : vector<2x128xf32>
    %57 = arith.divf %55, %56 : vector<2x128xf32>
    %58 = math.tanh %52 : vector<2x128xf32>
    %59 = vector.extract_strided_slice %57 {offsets = [0, 0], sizes = [2, 32], strides = [1, 1]} : vector<2x128xf32> to vector<2x32xf32>
    %60 = vector.extract_strided_slice %57 {offsets = [0, 32], sizes = [2, 32], strides = [1, 1]} : vector<2x128xf32> to vector<2x32xf32>
    %61 = vector.extract_strided_slice %58 {offsets = [0, 64], sizes = [2, 32], strides = [1, 1]} : vector<2x128xf32> to vector<2x32xf32>
    %62 = vector.extract_strided_slice %57 {offsets = [0, 96], sizes = [2, 32], strides = [1, 1]} : vector<2x128xf32> to vector<2x32xf32>
    %63 = arith.mulf %60, %26 : vector<2x32xf32>
    %64 = arith.mulf %59, %61 : vector<2x32xf32>
    %65 = arith.addf %63, %64 : vector<2x32xf32>
    %66 = math.tanh %65 : vector<2x32xf32>
    %67 = arith.mulf %62, %66 : vector<2x32xf32>
    %c0_34 = arith.constant 0 : index
    %c0_35 = arith.constant 0 : index
    %68 = vector.load %arg15[%c0_34, %c0_35] : memref<16x32xf32, #tpu.memory_space<vmem>>, vector<2x32xf32>
    tpu.vector_store %arg15[%c0_34, %c0_35], %67 {strides = array<i32>} : memref<16x32xf32, #tpu.memory_space<vmem>>, vector<2x32xf32>,
    %69 = vector.extract_strided_slice %18 {offsets = [2, 0], sizes = [2, 128], strides = [1, 1]} : vector<16x128xf32> to vector<2x128xf32>
    %70 = arith.truncf %45 : vector<2x32xf32> to vector<2x32xbf16>
    %cst_36 = arith.constant dense<0.000000e+00> : vector<2x128xf32>
    %71 = tpu.matmul %70, %11, %cst_36 {dimension_numbers = #tpu.dot_dimension_numbers<[1], [0], [0], [1], [0, 0, 1, 1], [], []>} : vector<2x32xbf16>, vector<32x128xbf16>, vector<2x128xf32> -> vector<2x128xf32>
    %72 = arith.addf %69, %71 : vector<2x128xf32>
    %73 = arith.negf %72 : vector<2x128xf32>
    %74 = math.exp %73 : vector<2x128xf32>
    %cst_37 = arith.constant 1.000000e+00 : f32
    %75 = vector.broadcast %cst_37 : f32 to vector<2x128xf32>
    %76 = arith.addf %75, %74 : vector<2x128xf32>
    %77 = arith.divf %75, %76 : vector<2x128xf32>
    %78 = math.tanh %72 : vector<2x128xf32>
    %79 = vector.extract_strided_slice %77 {offsets = [0, 0], sizes = [2, 32], strides = [1, 1]} : vector<2x128xf32> to vector<2x32xf32>
    %80 = vector.extract_strided_slice %77 {offsets = [0, 32], sizes = [2, 32], strides = [1, 1]} : vector<2x128xf32> to vector<2x32xf32>
    %81 = vector.extract_strided_slice %78 {offsets = [0, 64], sizes = [2, 32], strides = [1, 1]} : vector<2x128xf32> to vector<2x32xf32>
    %82 = vector.extract_strided_slice %77 {offsets = [0, 96], sizes = [2, 32], strides = [1, 1]} : vector<2x128xf32> to vector<2x32xf32>
    %83 = arith.mulf %80, %43 : vector<2x32xf32>
    %84 = arith.mulf %79, %81 : vector<2x32xf32>
    %85 = arith.addf %83, %84 : vector<2x32xf32>
    %86 = math.tanh %85 : vector<2x32xf32>
    %87 = arith.mulf %82, %86 : vector<2x32xf32>
    %88 = arith.truncf %87 : vector<2x32xf32> to vector<2x32xbf16>
    %cst_38 = arith.constant dense<0.000000e+00> : vector<2x128xf32>
    %89 = tpu.matmul %88, %10, %cst_38 {dimension_numbers = #tpu.dot_dimension_numbers<[1], [0], [0], [1], [0, 0, 1, 1], [], []>} : vector<2x32xbf16>, vector<32x128xbf16>, vector<2x128xf32> -> vector<2x128xf32>
    %90 = arith.truncf %67 : vector<2x32xf32> to vector<2x32xbf16>
    %cst_39 = arith.constant dense<0.000000e+00> : vector<2x128xf32>
    %91 = tpu.matmul %90, %12, %cst_39 {dimension_numbers = #tpu.dot_dimension_numbers<[1], [0], [0], [1], [0, 0, 1, 1], [], []>} : vector<2x32xbf16>, vector<32x128xbf16>, vector<2x128xf32> -> vector<2x128xf32>
    %92 = arith.addf %89, %91 : vector<2x128xf32>
    %93 = vector.broadcast %14 : vector<1x128xf32> to vector<2x128xf32>
    %94 = arith.addf %92, %93 : vector<2x128xf32>
    %95 = arith.negf %94 : vector<2x128xf32>
    %96 = math.exp %95 : vector<2x128xf32>
    %cst_40 = arith.constant 1.000000e+00 : f32
    %97 = vector.broadcast %cst_40 : f32 to vector<2x128xf32>
    %98 = arith.addf %97, %96 : vector<2x128xf32>
    %99 = arith.divf %97, %98 : vector<2x128xf32>
    %100 = math.tanh %94 : vector<2x128xf32>
    %101 = vector.extract_strided_slice %99 {offsets = [0, 0], sizes = [2, 32], strides = [1, 1]} : vector<2x128xf32> to vector<2x32xf32>
    %102 = vector.extract_strided_slice %99 {offsets = [0, 32], sizes = [2, 32], strides = [1, 1]} : vector<2x128xf32> to vector<2x32xf32>
    %103 = vector.extract_strided_slice %100 {offsets = [0, 64], sizes = [2, 32], strides = [1, 1]} : vector<2x128xf32> to vector<2x32xf32>
    %104 = vector.extract_strided_slice %99 {offsets = [0, 96], sizes = [2, 32], strides = [1, 1]} : vector<2x128xf32> to vector<2x32xf32>
    %105 = arith.mulf %102, %65 : vector<2x32xf32>
    %106 = arith.mulf %101, %103 : vector<2x32xf32>
    %107 = arith.addf %105, %106 : vector<2x32xf32>
    %108 = math.tanh %107 : vector<2x32xf32>
    %109 = arith.mulf %104, %108 : vector<2x32xf32>
    %c2 = arith.constant 2 : index
    %c0_41 = arith.constant 0 : index
    %110 = vector.load %arg15[%c2, %c0_41] : memref<16x32xf32, #tpu.memory_space<vmem>>, vector<2x32xf32>
    tpu.vector_store %arg15[%c2, %c0_41], %109 {strides = array<i32>} : memref<16x32xf32, #tpu.memory_space<vmem>>, vector<2x32xf32>,
    %111 = vector.extract_strided_slice %18 {offsets = [4, 0], sizes = [2, 128], strides = [1, 1]} : vector<16x128xf32> to vector<2x128xf32>
    %112 = arith.truncf %87 : vector<2x32xf32> to vector<2x32xbf16>
    %cst_42 = arith.constant dense<0.000000e+00> : vector<2x128xf32>
    %113 = tpu.matmul %112, %11, %cst_42 {dimension_numbers = #tpu.dot_dimension_numbers<[1], [0], [0], [1], [0, 0, 1, 1], [], []>} : vector<2x32xbf16>, vector<32x128xbf16>, vector<2x128xf32> -> vector<2x128xf32>
    %114 = arith.addf %111, %113 : vector<2x128xf32>
    %115 = arith.negf %114 : vector<2x128xf32>
    %116 = math.exp %115 : vector<2x128xf32>
    %cst_43 = arith.constant 1.000000e+00 : f32
    %117 = vector.broadcast %cst_43 : f32 to vector<2x128xf32>
    %118 = arith.addf %117, %116 : vector<2x128xf32>
    %119 = arith.divf %117, %118 : vector<2x128xf32>
    %120 = math.tanh %114 : vector<2x128xf32>
    %121 = vector.extract_strided_slice %119 {offsets = [0, 0], sizes = [2, 32], strides = [1, 1]} : vector<2x128xf32> to vector<2x32xf32>
    %122 = vector.extract_strided_slice %119 {offsets = [0, 32], sizes = [2, 32], strides = [1, 1]} : vector<2x128xf32> to vector<2x32xf32>
    %123 = vector.extract_strided_slice %120 {offsets = [0, 64], sizes = [2, 32], strides = [1, 1]} : vector<2x128xf32> to vector<2x32xf32>
    %124 = vector.extract_strided_slice %119 {offsets = [0, 96], sizes = [2, 32], strides = [1, 1]} : vector<2x128xf32> to vector<2x32xf32>
    %125 = arith.mulf %122, %85 : vector<2x32xf32>
    %126 = arith.mulf %121, %123 : vector<2x32xf32>
    %127 = arith.addf %125, %126 : vector<2x32xf32>
    %128 = math.tanh %127 : vector<2x32xf32>
    %129 = arith.mulf %124, %128 : vector<2x32xf32>
    %130 = arith.truncf %129 : vector<2x32xf32> to vector<2x32xbf16>
    %cst_44 = arith.constant dense<0.000000e+00> : vector<2x128xf32>
    %131 = tpu.matmul %130, %10, %cst_44 {dimension_numbers = #tpu.dot_dimension_numbers<[1], [0], [0], [1], [0, 0, 1, 1], [], []>} : vector<2x32xbf16>, vector<32x128xbf16>, vector<2x128xf32> -> vector<2x128xf32>
    %132 = arith.truncf %109 : vector<2x32xf32> to vector<2x32xbf16>
    %cst_45 = arith.constant dense<0.000000e+00> : vector<2x128xf32>
    %133 = tpu.matmul %132, %12, %cst_45 {dimension_numbers = #tpu.dot_dimension_numbers<[1], [0], [0], [1], [0, 0, 1, 1], [], []>} : vector<2x32xbf16>, vector<32x128xbf16>, vector<2x128xf32> -> vector<2x128xf32>
    %134 = arith.addf %131, %133 : vector<2x128xf32>
    %135 = vector.broadcast %14 : vector<1x128xf32> to vector<2x128xf32>
    %136 = arith.addf %134, %135 : vector<2x128xf32>
    %137 = arith.negf %136 : vector<2x128xf32>
    %138 = math.exp %137 : vector<2x128xf32>
    %cst_46 = arith.constant 1.000000e+00 : f32
    %139 = vector.broadcast %cst_46 : f32 to vector<2x128xf32>
    %140 = arith.addf %139, %138 : vector<2x128xf32>
    %141 = arith.divf %139, %140 : vector<2x128xf32>
    %142 = math.tanh %136 : vector<2x128xf32>
    %143 = vector.extract_strided_slice %141 {offsets = [0, 0], sizes = [2, 32], strides = [1, 1]} : vector<2x128xf32> to vector<2x32xf32>
    %144 = vector.extract_strided_slice %141 {offsets = [0, 32], sizes = [2, 32], strides = [1, 1]} : vector<2x128xf32> to vector<2x32xf32>
    %145 = vector.extract_strided_slice %142 {offsets = [0, 64], sizes = [2, 32], strides = [1, 1]} : vector<2x128xf32> to vector<2x32xf32>
    %146 = vector.extract_strided_slice %141 {offsets = [0, 96], sizes = [2, 32], strides = [1, 1]} : vector<2x128xf32> to vector<2x32xf32>
    %147 = arith.mulf %144, %107 : vector<2x32xf32>
    %148 = arith.mulf %143, %145 : vector<2x32xf32>
    %149 = arith.addf %147, %148 : vector<2x32xf32>
    %150 = math.tanh %149 : vector<2x32xf32>
    %151 = arith.mulf %146, %150 : vector<2x32xf32>
    %c4 = arith.constant 4 : index
    %c0_47 = arith.constant 0 : index
    %152 = vector.load %arg15[%c4, %c0_47] : memref<16x32xf32, #tpu.memory_space<vmem>>, vector<2x32xf32>
    tpu.vector_store %arg15[%c4, %c0_47], %151 {strides = array<i32>} : memref<16x32xf32, #tpu.memory_space<vmem>>, vector<2x32xf32>,
    %153 = vector.extract_strided_slice %18 {offsets = [6, 0], sizes = [2, 128], strides = [1, 1]} : vector<16x128xf32> to vector<2x128xf32>
    %154 = arith.truncf %129 : vector<2x32xf32> to vector<2x32xbf16>
    %cst_48 = arith.constant dense<0.000000e+00> : vector<2x128xf32>
    %155 = tpu.matmul %154, %11, %cst_48 {dimension_numbers = #tpu.dot_dimension_numbers<[1], [0], [0], [1], [0, 0, 1, 1], [], []>} : vector<2x32xbf16>, vector<32x128xbf16>, vector<2x128xf32> -> vector<2x128xf32>
    %156 = arith.addf %153, %155 : vector<2x128xf32>
    %157 = arith.negf %156 : vector<2x128xf32>
    %158 = math.exp %157 : vector<2x128xf32>
    %cst_49 = arith.constant 1.000000e+00 : f32
    %159 = vector.broadcast %cst_49 : f32 to vector<2x128xf32>
    %160 = arith.addf %159, %158 : vector<2x128xf32>
    %161 = arith.divf %159, %160 : vector<2x128xf32>
    %162 = math.tanh %156 : vector<2x128xf32>
    %163 = vector.extract_strided_slice %161 {offsets = [0, 0], sizes = [2, 32], strides = [1, 1]} : vector<2x128xf32> to vector<2x32xf32>
    %164 = vector.extract_strided_slice %161 {offsets = [0, 32], sizes = [2, 32], strides = [1, 1]} : vector<2x128xf32> to vector<2x32xf32>
    %165 = vector.extract_strided_slice %162 {offsets = [0, 64], sizes = [2, 32], strides = [1, 1]} : vector<2x128xf32> to vector<2x32xf32>
    %166 = vector.extract_strided_slice %161 {offsets = [0, 96], sizes = [2, 32], strides = [1, 1]} : vector<2x128xf32> to vector<2x32xf32>
    %167 = arith.mulf %164, %127 : vector<2x32xf32>
    %168 = arith.mulf %163, %165 : vector<2x32xf32>
    %169 = arith.addf %167, %168 : vector<2x32xf32>
    %170 = math.tanh %169 : vector<2x32xf32>
    %171 = arith.mulf %166, %170 : vector<2x32xf32>
    %172 = arith.truncf %171 : vector<2x32xf32> to vector<2x32xbf16>
    %cst_50 = arith.constant dense<0.000000e+00> : vector<2x128xf32>
    %173 = tpu.matmul %172, %10, %cst_50 {dimension_numbers = #tpu.dot_dimension_numbers<[1], [0], [0], [1], [0, 0, 1, 1], [], []>} : vector<2x32xbf16>, vector<32x128xbf16>, vector<2x128xf32> -> vector<2x128xf32>
    %174 = arith.truncf %151 : vector<2x32xf32> to vector<2x32xbf16>
    %cst_51 = arith.constant dense<0.000000e+00> : vector<2x128xf32>
    %175 = tpu.matmul %174, %12, %cst_51 {dimension_numbers = #tpu.dot_dimension_numbers<[1], [0], [0], [1], [0, 0, 1, 1], [], []>} : vector<2x32xbf16>, vector<32x128xbf16>, vector<2x128xf32> -> vector<2x128xf32>
    %176 = arith.addf %173, %175 : vector<2x128xf32>
    %177 = vector.broadcast %14 : vector<1x128xf32> to vector<2x128xf32>
    %178 = arith.addf %176, %177 : vector<2x128xf32>
    %179 = arith.negf %178 : vector<2x128xf32>
    %180 = math.exp %179 : vector<2x128xf32>
    %cst_52 = arith.constant 1.000000e+00 : f32
    %181 = vector.broadcast %cst_52 : f32 to vector<2x128xf32>
    %182 = arith.addf %181, %180 : vector<2x128xf32>
    %183 = arith.divf %181, %182 : vector<2x128xf32>
    %184 = math.tanh %178 : vector<2x128xf32>
    %185 = vector.extract_strided_slice %183 {offsets = [0, 0], sizes = [2, 32], strides = [1, 1]} : vector<2x128xf32> to vector<2x32xf32>
    %186 = vector.extract_strided_slice %183 {offsets = [0, 32], sizes = [2, 32], strides = [1, 1]} : vector<2x128xf32> to vector<2x32xf32>
    %187 = vector.extract_strided_slice %184 {offsets = [0, 64], sizes = [2, 32], strides = [1, 1]} : vector<2x128xf32> to vector<2x32xf32>
    %188 = vector.extract_strided_slice %183 {offsets = [0, 96], sizes = [2, 32], strides = [1, 1]} : vector<2x128xf32> to vector<2x32xf32>
    %189 = arith.mulf %186, %149 : vector<2x32xf32>
    %190 = arith.mulf %185, %187 : vector<2x32xf32>
    %191 = arith.addf %189, %190 : vector<2x32xf32>
    %192 = math.tanh %191 : vector<2x32xf32>
    %193 = arith.mulf %188, %192 : vector<2x32xf32>
    %c6 = arith.constant 6 : index
    %c0_53 = arith.constant 0 : index
    %194 = vector.load %arg15[%c6, %c0_53] : memref<16x32xf32, #tpu.memory_space<vmem>>, vector<2x32xf32>
    tpu.vector_store %arg15[%c6, %c0_53], %193 {strides = array<i32>} : memref<16x32xf32, #tpu.memory_space<vmem>>, vector<2x32xf32>,
    %195 = vector.extract_strided_slice %18 {offsets = [8, 0], sizes = [2, 128], strides = [1, 1]} : vector<16x128xf32> to vector<2x128xf32>
    %196 = arith.truncf %171 : vector<2x32xf32> to vector<2x32xbf16>
    %cst_54 = arith.constant dense<0.000000e+00> : vector<2x128xf32>
    %197 = tpu.matmul %196, %11, %cst_54 {dimension_numbers = #tpu.dot_dimension_numbers<[1], [0], [0], [1], [0, 0, 1, 1], [], []>} : vector<2x32xbf16>, vector<32x128xbf16>, vector<2x128xf32> -> vector<2x128xf32>
    %198 = arith.addf %195, %197 : vector<2x128xf32>
    %199 = arith.negf %198 : vector<2x128xf32>
    %200 = math.exp %199 : vector<2x128xf32>
    %cst_55 = arith.constant 1.000000e+00 : f32
    %201 = vector.broadcast %cst_55 : f32 to vector<2x128xf32>
    %202 = arith.addf %201, %200 : vector<2x128xf32>
    %203 = arith.divf %201, %202 : vector<2x128xf32>
    %204 = math.tanh %198 : vector<2x128xf32>
    %205 = vector.extract_strided_slice %203 {offsets = [0, 0], sizes = [2, 32], strides = [1, 1]} : vector<2x128xf32> to vector<2x32xf32>
    %206 = vector.extract_strided_slice %203 {offsets = [0, 32], sizes = [2, 32], strides = [1, 1]} : vector<2x128xf32> to vector<2x32xf32>
    %207 = vector.extract_strided_slice %204 {offsets = [0, 64], sizes = [2, 32], strides = [1, 1]} : vector<2x128xf32> to vector<2x32xf32>
    %208 = vector.extract_strided_slice %203 {offsets = [0, 96], sizes = [2, 32], strides = [1, 1]} : vector<2x128xf32> to vector<2x32xf32>
    %209 = arith.mulf %206, %169 : vector<2x32xf32>
    %210 = arith.mulf %205, %207 : vector<2x32xf32>
    %211 = arith.addf %209, %210 : vector<2x32xf32>
    %212 = math.tanh %211 : vector<2x32xf32>
    %213 = arith.mulf %208, %212 : vector<2x32xf32>
    %214 = arith.truncf %213 : vector<2x32xf32> to vector<2x32xbf16>
    %cst_56 = arith.constant dense<0.000000e+00> : vector<2x128xf32>
    %215 = tpu.matmul %214, %10, %cst_56 {dimension_numbers = #tpu.dot_dimension_numbers<[1], [0], [0], [1], [0, 0, 1, 1], [], []>} : vector<2x32xbf16>, vector<32x128xbf16>, vector<2x128xf32> -> vector<2x128xf32>
    %216 = arith.truncf %193 : vector<2x32xf32> to vector<2x32xbf16>
    %cst_57 = arith.constant dense<0.000000e+00> : vector<2x128xf32>
    %217 = tpu.matmul %216, %12, %cst_57 {dimension_numbers = #tpu.dot_dimension_numbers<[1], [0], [0], [1], [0, 0, 1, 1], [], []>} : vector<2x32xbf16>, vector<32x128xbf16>, vector<2x128xf32> -> vector<2x128xf32>
    %218 = arith.addf %215, %217 : vector<2x128xf32>
    %219 = vector.broadcast %14 : vector<1x128xf32> to vector<2x128xf32>
    %220 = arith.addf %218, %219 : vector<2x128xf32>
    %221 = arith.negf %220 : vector<2x128xf32>
    %222 = math.exp %221 : vector<2x128xf32>
    %cst_58 = arith.constant 1.000000e+00 : f32
    %223 = vector.broadcast %cst_58 : f32 to vector<2x128xf32>
    %224 = arith.addf %223, %222 : vector<2x128xf32>
    %225 = arith.divf %223, %224 : vector<2x128xf32>
    %226 = math.tanh %220 : vector<2x128xf32>
    %227 = vector.extract_strided_slice %225 {offsets = [0, 0], sizes = [2, 32], strides = [1, 1]} : vector<2x128xf32> to vector<2x32xf32>
    %228 = vector.extract_strided_slice %225 {offsets = [0, 32], sizes = [2, 32], strides = [1, 1]} : vector<2x128xf32> to vector<2x32xf32>
    %229 = vector.extract_strided_slice %226 {offsets = [0, 64], sizes = [2, 32], strides = [1, 1]} : vector<2x128xf32> to vector<2x32xf32>
    %230 = vector.extract_strided_slice %225 {offsets = [0, 96], sizes = [2, 32], strides = [1, 1]} : vector<2x128xf32> to vector<2x32xf32>
    %231 = arith.mulf %228, %191 : vector<2x32xf32>
    %232 = arith.mulf %227, %229 : vector<2x32xf32>
    %233 = arith.addf %231, %232 : vector<2x32xf32>
    %234 = math.tanh %233 : vector<2x32xf32>
    %235 = arith.mulf %230, %234 : vector<2x32xf32>
    %c8 = arith.constant 8 : index
    %c0_59 = arith.constant 0 : index
    %236 = vector.load %arg15[%c8, %c0_59] : memref<16x32xf32, #tpu.memory_space<vmem>>, vector<2x32xf32>
    tpu.vector_store %arg15[%c8, %c0_59], %235 {strides = array<i32>} : memref<16x32xf32, #tpu.memory_space<vmem>>, vector<2x32xf32>,
    %237 = vector.extract_strided_slice %18 {offsets = [10, 0], sizes = [2, 128], strides = [1, 1]} : vector<16x128xf32> to vector<2x128xf32>
    %238 = arith.truncf %213 : vector<2x32xf32> to vector<2x32xbf16>
    %cst_60 = arith.constant dense<0.000000e+00> : vector<2x128xf32>
    %239 = tpu.matmul %238, %11, %cst_60 {dimension_numbers = #tpu.dot_dimension_numbers<[1], [0], [0], [1], [0, 0, 1, 1], [], []>} : vector<2x32xbf16>, vector<32x128xbf16>, vector<2x128xf32> -> vector<2x128xf32>
    %240 = arith.addf %237, %239 : vector<2x128xf32>
    %241 = arith.negf %240 : vector<2x128xf32>
    %242 = math.exp %241 : vector<2x128xf32>
    %cst_61 = arith.constant 1.000000e+00 : f32
    %243 = vector.broadcast %cst_61 : f32 to vector<2x128xf32>
    %244 = arith.addf %243, %242 : vector<2x128xf32>
    %245 = arith.divf %243, %244 : vector<2x128xf32>
    %246 = math.tanh %240 : vector<2x128xf32>
    %247 = vector.extract_strided_slice %245 {offsets = [0, 0], sizes = [2, 32], strides = [1, 1]} : vector<2x128xf32> to vector<2x32xf32>
    %248 = vector.extract_strided_slice %245 {offsets = [0, 32], sizes = [2, 32], strides = [1, 1]} : vector<2x128xf32> to vector<2x32xf32>
    %249 = vector.extract_strided_slice %246 {offsets = [0, 64], sizes = [2, 32], strides = [1, 1]} : vector<2x128xf32> to vector<2x32xf32>
    %250 = vector.extract_strided_slice %245 {offsets = [0, 96], sizes = [2, 32], strides = [1, 1]} : vector<2x128xf32> to vector<2x32xf32>
    %251 = arith.mulf %248, %211 : vector<2x32xf32>
    %252 = arith.mulf %247, %249 : vector<2x32xf32>
    %253 = arith.addf %251, %252 : vector<2x32xf32>
    %254 = math.tanh %253 : vector<2x32xf32>
    %255 = arith.mulf %250, %254 : vector<2x32xf32>
    %256 = arith.truncf %255 : vector<2x32xf32> to vector<2x32xbf16>
    %cst_62 = arith.constant dense<0.000000e+00> : vector<2x128xf32>
    %257 = tpu.matmul %256, %10, %cst_62 {dimension_numbers = #tpu.dot_dimension_numbers<[1], [0], [0], [1], [0, 0, 1, 1], [], []>} : vector<2x32xbf16>, vector<32x128xbf16>, vector<2x128xf32> -> vector<2x128xf32>
    %258 = arith.truncf %235 : vector<2x32xf32> to vector<2x32xbf16>
    %cst_63 = arith.constant dense<0.000000e+00> : vector<2x128xf32>
    %259 = tpu.matmul %258, %12, %cst_63 {dimension_numbers = #tpu.dot_dimension_numbers<[1], [0], [0], [1], [0, 0, 1, 1], [], []>} : vector<2x32xbf16>, vector<32x128xbf16>, vector<2x128xf32> -> vector<2x128xf32>
    %260 = arith.addf %257, %259 : vector<2x128xf32>
    %261 = vector.broadcast %14 : vector<1x128xf32> to vector<2x128xf32>
    %262 = arith.addf %260, %261 : vector<2x128xf32>
    %263 = arith.negf %262 : vector<2x128xf32>
    %264 = math.exp %263 : vector<2x128xf32>
    %cst_64 = arith.constant 1.000000e+00 : f32
    %265 = vector.broadcast %cst_64 : f32 to vector<2x128xf32>
    %266 = arith.addf %265, %264 : vector<2x128xf32>
    %267 = arith.divf %265, %266 : vector<2x128xf32>
    %268 = math.tanh %262 : vector<2x128xf32>
    %269 = vector.extract_strided_slice %267 {offsets = [0, 0], sizes = [2, 32], strides = [1, 1]} : vector<2x128xf32> to vector<2x32xf32>
    %270 = vector.extract_strided_slice %267 {offsets = [0, 32], sizes = [2, 32], strides = [1, 1]} : vector<2x128xf32> to vector<2x32xf32>
    %271 = vector.extract_strided_slice %268 {offsets = [0, 64], sizes = [2, 32], strides = [1, 1]} : vector<2x128xf32> to vector<2x32xf32>
    %272 = vector.extract_strided_slice %267 {offsets = [0, 96], sizes = [2, 32], strides = [1, 1]} : vector<2x128xf32> to vector<2x32xf32>
    %273 = arith.mulf %270, %233 : vector<2x32xf32>
    %274 = arith.mulf %269, %271 : vector<2x32xf32>
    %275 = arith.addf %273, %274 : vector<2x32xf32>
    %276 = math.tanh %275 : vector<2x32xf32>
    %277 = arith.mulf %272, %276 : vector<2x32xf32>
    %c10 = arith.constant 10 : index
    %c0_65 = arith.constant 0 : index
    %278 = vector.load %arg15[%c10, %c0_65] : memref<16x32xf32, #tpu.memory_space<vmem>>, vector<2x32xf32>
    tpu.vector_store %arg15[%c10, %c0_65], %277 {strides = array<i32>} : memref<16x32xf32, #tpu.memory_space<vmem>>, vector<2x32xf32>,
    %279 = vector.extract_strided_slice %18 {offsets = [12, 0], sizes = [2, 128], strides = [1, 1]} : vector<16x128xf32> to vector<2x128xf32>
    %280 = arith.truncf %255 : vector<2x32xf32> to vector<2x32xbf16>
    %cst_66 = arith.constant dense<0.000000e+00> : vector<2x128xf32>
    %281 = tpu.matmul %280, %11, %cst_66 {dimension_numbers = #tpu.dot_dimension_numbers<[1], [0], [0], [1], [0, 0, 1, 1], [], []>} : vector<2x32xbf16>, vector<32x128xbf16>, vector<2x128xf32> -> vector<2x128xf32>
    %282 = arith.addf %279, %281 : vector<2x128xf32>
    %283 = arith.negf %282 : vector<2x128xf32>
    %284 = math.exp %283 : vector<2x128xf32>
    %cst_67 = arith.constant 1.000000e+00 : f32
    %285 = vector.broadcast %cst_67 : f32 to vector<2x128xf32>
    %286 = arith.addf %285, %284 : vector<2x128xf32>
    %287 = arith.divf %285, %286 : vector<2x128xf32>
    %288 = math.tanh %282 : vector<2x128xf32>
    %289 = vector.extract_strided_slice %287 {offsets = [0, 0], sizes = [2, 32], strides = [1, 1]} : vector<2x128xf32> to vector<2x32xf32>
    %290 = vector.extract_strided_slice %287 {offsets = [0, 32], sizes = [2, 32], strides = [1, 1]} : vector<2x128xf32> to vector<2x32xf32>
    %291 = vector.extract_strided_slice %288 {offsets = [0, 64], sizes = [2, 32], strides = [1, 1]} : vector<2x128xf32> to vector<2x32xf32>
    %292 = vector.extract_strided_slice %287 {offsets = [0, 96], sizes = [2, 32], strides = [1, 1]} : vector<2x128xf32> to vector<2x32xf32>
    %293 = arith.mulf %290, %253 : vector<2x32xf32>
    %294 = arith.mulf %289, %291 : vector<2x32xf32>
    %295 = arith.addf %293, %294 : vector<2x32xf32>
    %296 = math.tanh %295 : vector<2x32xf32>
    %297 = arith.mulf %292, %296 : vector<2x32xf32>
    %298 = arith.truncf %297 : vector<2x32xf32> to vector<2x32xbf16>
    %cst_68 = arith.constant dense<0.000000e+00> : vector<2x128xf32>
    %299 = tpu.matmul %298, %10, %cst_68 {dimension_numbers = #tpu.dot_dimension_numbers<[1], [0], [0], [1], [0, 0, 1, 1], [], []>} : vector<2x32xbf16>, vector<32x128xbf16>, vector<2x128xf32> -> vector<2x128xf32>
    %300 = arith.truncf %277 : vector<2x32xf32> to vector<2x32xbf16>
    %cst_69 = arith.constant dense<0.000000e+00> : vector<2x128xf32>
    %301 = tpu.matmul %300, %12, %cst_69 {dimension_numbers = #tpu.dot_dimension_numbers<[1], [0], [0], [1], [0, 0, 1, 1], [], []>} : vector<2x32xbf16>, vector<32x128xbf16>, vector<2x128xf32> -> vector<2x128xf32>
    %302 = arith.addf %299, %301 : vector<2x128xf32>
    %303 = vector.broadcast %14 : vector<1x128xf32> to vector<2x128xf32>
    %304 = arith.addf %302, %303 : vector<2x128xf32>
    %305 = arith.negf %304 : vector<2x128xf32>
    %306 = math.exp %305 : vector<2x128xf32>
    %cst_70 = arith.constant 1.000000e+00 : f32
    %307 = vector.broadcast %cst_70 : f32 to vector<2x128xf32>
    %308 = arith.addf %307, %306 : vector<2x128xf32>
    %309 = arith.divf %307, %308 : vector<2x128xf32>
    %310 = math.tanh %304 : vector<2x128xf32>
    %311 = vector.extract_strided_slice %309 {offsets = [0, 0], sizes = [2, 32], strides = [1, 1]} : vector<2x128xf32> to vector<2x32xf32>
    %312 = vector.extract_strided_slice %309 {offsets = [0, 32], sizes = [2, 32], strides = [1, 1]} : vector<2x128xf32> to vector<2x32xf32>
    %313 = vector.extract_strided_slice %310 {offsets = [0, 64], sizes = [2, 32], strides = [1, 1]} : vector<2x128xf32> to vector<2x32xf32>
    %314 = vector.extract_strided_slice %309 {offsets = [0, 96], sizes = [2, 32], strides = [1, 1]} : vector<2x128xf32> to vector<2x32xf32>
    %315 = arith.mulf %312, %275 : vector<2x32xf32>
    %316 = arith.mulf %311, %313 : vector<2x32xf32>
    %317 = arith.addf %315, %316 : vector<2x32xf32>
    %318 = math.tanh %317 : vector<2x32xf32>
    %319 = arith.mulf %314, %318 : vector<2x32xf32>
    %c12 = arith.constant 12 : index
    %c0_71 = arith.constant 0 : index
    %320 = vector.load %arg15[%c12, %c0_71] : memref<16x32xf32, #tpu.memory_space<vmem>>, vector<2x32xf32>
    tpu.vector_store %arg15[%c12, %c0_71], %319 {strides = array<i32>} : memref<16x32xf32, #tpu.memory_space<vmem>>, vector<2x32xf32>,
    %321 = vector.extract_strided_slice %18 {offsets = [14, 0], sizes = [2, 128], strides = [1, 1]} : vector<16x128xf32> to vector<2x128xf32>
    %322 = arith.truncf %297 : vector<2x32xf32> to vector<2x32xbf16>
    %cst_72 = arith.constant dense<0.000000e+00> : vector<2x128xf32>
    %323 = tpu.matmul %322, %11, %cst_72 {dimension_numbers = #tpu.dot_dimension_numbers<[1], [0], [0], [1], [0, 0, 1, 1], [], []>} : vector<2x32xbf16>, vector<32x128xbf16>, vector<2x128xf32> -> vector<2x128xf32>
    %324 = arith.addf %321, %323 : vector<2x128xf32>
    %325 = arith.negf %324 : vector<2x128xf32>
    %326 = math.exp %325 : vector<2x128xf32>
    %cst_73 = arith.constant 1.000000e+00 : f32
    %327 = vector.broadcast %cst_73 : f32 to vector<2x128xf32>
    %328 = arith.addf %327, %326 : vector<2x128xf32>
    %329 = arith.divf %327, %328 : vector<2x128xf32>
    %330 = math.tanh %324 : vector<2x128xf32>
    %331 = vector.extract_strided_slice %329 {offsets = [0, 0], sizes = [2, 32], strides = [1, 1]} : vector<2x128xf32> to vector<2x32xf32>
    %332 = vector.extract_strided_slice %329 {offsets = [0, 32], sizes = [2, 32], strides = [1, 1]} : vector<2x128xf32> to vector<2x32xf32>
    %333 = vector.extract_strided_slice %330 {offsets = [0, 64], sizes = [2, 32], strides = [1, 1]} : vector<2x128xf32> to vector<2x32xf32>
    %334 = vector.extract_strided_slice %329 {offsets = [0, 96], sizes = [2, 32], strides = [1, 1]} : vector<2x128xf32> to vector<2x32xf32>
    %335 = arith.mulf %332, %295 : vector<2x32xf32>
    %336 = arith.mulf %331, %333 : vector<2x32xf32>
    %337 = arith.addf %335, %336 : vector<2x32xf32>
    %338 = math.tanh %337 : vector<2x32xf32>
    %339 = arith.mulf %334, %338 : vector<2x32xf32>
    %340 = arith.truncf %339 : vector<2x32xf32> to vector<2x32xbf16>
    %cst_74 = arith.constant dense<0.000000e+00> : vector<2x128xf32>
    %341 = tpu.matmul %340, %10, %cst_74 {dimension_numbers = #tpu.dot_dimension_numbers<[1], [0], [0], [1], [0, 0, 1, 1], [], []>} : vector<2x32xbf16>, vector<32x128xbf16>, vector<2x128xf32> -> vector<2x128xf32>
    %342 = arith.truncf %319 : vector<2x32xf32> to vector<2x32xbf16>
    %cst_75 = arith.constant dense<0.000000e+00> : vector<2x128xf32>
    %343 = tpu.matmul %342, %12, %cst_75 {dimension_numbers = #tpu.dot_dimension_numbers<[1], [0], [0], [1], [0, 0, 1, 1], [], []>} : vector<2x32xbf16>, vector<32x128xbf16>, vector<2x128xf32> -> vector<2x128xf32>
    %344 = arith.addf %341, %343 : vector<2x128xf32>
    %345 = vector.broadcast %14 : vector<1x128xf32> to vector<2x128xf32>
    %346 = arith.addf %344, %345 : vector<2x128xf32>
    %347 = arith.negf %346 : vector<2x128xf32>
    %348 = math.exp %347 : vector<2x128xf32>
    %cst_76 = arith.constant 1.000000e+00 : f32
    %349 = vector.broadcast %cst_76 : f32 to vector<2x128xf32>
    %350 = arith.addf %349, %348 : vector<2x128xf32>
    %351 = arith.divf %349, %350 : vector<2x128xf32>
    %352 = math.tanh %346 : vector<2x128xf32>
    %353 = vector.extract_strided_slice %351 {offsets = [0, 0], sizes = [2, 32], strides = [1, 1]} : vector<2x128xf32> to vector<2x32xf32>
    %354 = vector.extract_strided_slice %351 {offsets = [0, 32], sizes = [2, 32], strides = [1, 1]} : vector<2x128xf32> to vector<2x32xf32>
    %355 = vector.extract_strided_slice %352 {offsets = [0, 64], sizes = [2, 32], strides = [1, 1]} : vector<2x128xf32> to vector<2x32xf32>
    %356 = vector.extract_strided_slice %351 {offsets = [0, 96], sizes = [2, 32], strides = [1, 1]} : vector<2x128xf32> to vector<2x32xf32>
    %357 = arith.mulf %354, %317 : vector<2x32xf32>
    %358 = arith.mulf %353, %355 : vector<2x32xf32>
    %359 = arith.addf %357, %358 : vector<2x32xf32>
    %360 = math.tanh %359 : vector<2x32xf32>
    %361 = arith.mulf %356, %360 : vector<2x32xf32>
    %c14 = arith.constant 14 : index
    %c0_77 = arith.constant 0 : index
    %362 = vector.load %arg15[%c14, %c0_77] : memref<16x32xf32, #tpu.memory_space<vmem>>, vector<2x32xf32>
    tpu.vector_store %arg15[%c14, %c0_77], %361 {strides = array<i32>} : memref<16x32xf32, #tpu.memory_space<vmem>>, vector<2x32xf32>,
    %c0_78 = arith.constant 0 : index
    %c0_79 = arith.constant 0 : index
    %c0_80 = arith.constant 0 : index
    %363 = vector.load %arg13[%c0_78, %c0_79, %c0_80] : memref<2x2x32xf32, #tpu.memory_space<vmem>>, vector<1x2x32xf32>
    %364 = vector.shape_cast %363 : vector<1x2x32xf32> to vector<2x32xf32>
    %365 = vector.shape_cast %339 : vector<2x32xf32> to vector<1x2x32xf32>
    tpu.vector_store %arg13[%c0_78, %c0_79, %c0_80], %365 {strides = array<i32>} : memref<2x2x32xf32, #tpu.memory_space<vmem>>, vector<1x2x32xf32>,
    %c0_81 = arith.constant 0 : index
    %c0_82 = arith.constant 0 : index
    %c0_83 = arith.constant 0 : index
    %366 = vector.load %arg14[%c0_81, %c0_82, %c0_83] : memref<2x2x32xf32, #tpu.memory_space<vmem>>, vector<1x2x32xf32>
    %367 = vector.shape_cast %366 : vector<1x2x32xf32> to vector<2x32xf32>
    %368 = vector.shape_cast %337 : vector<2x32xf32> to vector<1x2x32xf32>
    tpu.vector_store %arg14[%c0_81, %c0_82, %c0_83], %368 {strides = array<i32>} : memref<2x2x32xf32, #tpu.memory_space<vmem>>, vector<1x2x32xf32>,
    %c1_84 = arith.constant 1 : index
    %c0_85 = arith.constant 0 : index
    %c0_86 = arith.constant 0 : index
    %369 = vector.load %arg13[%c1_84, %c0_85, %c0_86] : memref<2x2x32xf32, #tpu.memory_space<vmem>>, vector<1x2x32xf32>
    %370 = vector.shape_cast %369 : vector<1x2x32xf32> to vector<2x32xf32>
    %371 = vector.shape_cast %361 : vector<2x32xf32> to vector<1x2x32xf32>
    tpu.vector_store %arg13[%c1_84, %c0_85, %c0_86], %371 {strides = array<i32>} : memref<2x2x32xf32, #tpu.memory_space<vmem>>, vector<1x2x32xf32>,
    %c1_87 = arith.constant 1 : index
    %c0_88 = arith.constant 0 : index
    %c0_89 = arith.constant 0 : index
    %372 = vector.load %arg14[%c1_87, %c0_88, %c0_89] : memref<2x2x32xf32, #tpu.memory_space<vmem>>, vector<1x2x32xf32>
    %373 = vector.shape_cast %372 : vector<1x2x32xf32> to vector<2x32xf32>
    %374 = vector.shape_cast %359 : vector<2x32xf32> to vector<1x2x32xf32>
    tpu.vector_store %arg14[%c1_87, %c0_88, %c0_89], %374 {strides = array<i32>} : memref<2x2x32xf32, #tpu.memory_space<vmem>>, vector<1x2x32xf32>,
    %c0_90 = arith.constant 0 : index
    %c0_91 = arith.constant 0 : index
    %375 = vector.load %arg15[%c0_90, %c0_91] : memref<16x32xf32, #tpu.memory_space<vmem>>, vector<16x32xf32>
    %376 = arith.truncf %375 : vector<16x32xf32> to vector<16x32xbf16>
    %c0_92 = arith.constant 0 : index
    %c0_93 = arith.constant 0 : index
    %377 = vector.load %arg10[%c0_92, %c0_93] : memref<32x128xbf16, #tpu.memory_space<vmem>>, vector<32x128xbf16>
    %cst_94 = arith.constant dense<0.000000e+00> : vector<16x128xf32>
    %378 = tpu.matmul %376, %377, %cst_94 {dimension_numbers = #tpu.dot_dimension_numbers<[1], [0], [0], [1], [0, 0, 1, 1], [], []>} : vector<16x32xbf16>, vector<32x128xbf16>, vector<16x128xf32> -> vector<16x128xf32>
    %c0_95 = arith.constant 0 : index
    %c0_96 = arith.constant 0 : index
    %379 = vector.load %arg11[%c0_95, %c0_96] : memref<1x128xf32, #tpu.memory_space<vmem>>, vector<1x128xf32>
    %380 = vector.broadcast %379 : vector<1x128xf32> to vector<16x128xf32>
    %381 = arith.addf %378, %380 : vector<16x128xf32>
    %c0_97 = arith.constant 0 : index
    %c0_98 = arith.constant 0 : index
    %382 = vector.load %arg12[%c0_97, %c0_98] : memref<16x128xf32, #tpu.memory_space<vmem>>, vector<16x128xf32>
    tpu.vector_store %arg12[%c0_97, %c0_98], %381 {strides = array<i32>} : memref<16x128xf32, #tpu.memory_space<vmem>>, vector<16x128xf32>,
    return
  }
}

</mosaic_0001>

<bundles_post_ra>
// kernel: tpu_custom_call.1
= control target key start
LH: loop header
LB: loop body
LE: loop exit
PB: predicated region body
PF: predicated region fallthrough
CT: control target
= control target key end

     0   :  { %20 = vsyncpa [#allocation4], 0  ;;  %s3317_s0 = inlined_call_operand.vmem [shape: s32[16,1], index: 0, kind: input, shape index: {}]   ;;  %s3318_s1 = inlined_call_operand.vmem [shape: f32[32,16], index: 1, kind: input, shape index: {}]   ;;  %s3319_s2 = inlined_call_operand.hbm [shape: f32[2,2,32], index: 2, kind: input, shape index: {}]   ;;  %s3320_s3 = inlined_call_operand.hbm [shape: f32[2,2,32], index: 3, kind: input, shape index: {}]   ;;  %s3321_s4 = inlined_call_operand.hbm [shape: bf16[16,128], index: 4, kind: input, shape index: {}]   ;;  %s3322_s5 = inlined_call_operand.vmem [shape: bf16[32,128], index: 5, kind: input, shape index: {}]   ;;  %s3323_s6 = inlined_call_operand.vmem [shape: f32[1,128], index: 6, kind: input, shape index: {}]   ;;  %s3324_s7 = inlined_call_operand.vmem [shape: bf16[32,128], index: 7, kind: input, shape index: {}]   ;;  %s3325_s8 = inlined_call_operand.vmem [shape: bf16[32,128], index: 8, kind: input, shape index: {}]   ;;  %s3326_s9 = inlined_call_operand.vmem [shape: f32[1,128], index: 9, kind: input, shape index: {}]   ;;  %s3327_s10 = inlined_call_operand.vmem [shape: bf16[32,128], index: 10, kind: input, shape index: {}]   ;;  %s3328_s11 = inlined_call_operand.vmem [shape: f32[1,128], index: 11, kind: input, shape index: {}]   ;;  %s3329_s12 = inlined_call_operand.hbm [shape: f32[16,128], index: 12, kind: output, shape index: {0}]   ;;  %s3330_s13 = inlined_call_operand.hbm [shape: f32[2,2,32], index: 13, kind: output, shape index: {1}]   ;;  %s3331_s14 = inlined_call_operand.hbm [shape: f32[2,2,32], index: 14, kind: output, shape index: {2}]  }
   0x1   :  { %21 = vsyncpa [#allocation7], 0 }
   0x2   :  { %22 = vsyncpa [#allocation5], 0 }
   0x3   :  { %23 = vsyncpa [#allocation11], 0  ;;  %s2682_s29 = smov [#allocation6]   ;;  %s2683_s15 = smov [#allocation3]  }
   0x4   :  { %s45_s30 = sshll.u32 %s2682_s29, 4  ;;  %s33_s16 = sshll.u32 %s2683_s15, 4  ;;  %s46_s30 = int_to_ptr.vmem [resolvable:$true] %s45_s30  ;;  %s2773_s16 = int_to_ptr.vmem [resolvable:$true] %s33_s16 }
   0x5   :  { %s2542_s19 = scalar_lea.hbm %s3320_s3, 64 }
   0x6   :  { %p2543_p0 = scmp.ne.s32.totalorder %s3320_s3, %s2542_s19  ;;  %p2546_p1 = scmp.lt.u32.totalorder %s2542_s19, %s3320_s3 }
   0x8   :  { %p2548_p2 = pnand %p2546_p1, %p2543_p0 }
   0xa   :  { %2551 = shalt.err (!%p2548_p2)
}
   0xb   :  { %s2552_s24 = scalar_lea.vmem %s46_s30, 64  ;;  %p2557_p4 = scmp.lt.s32.totalorder %s46_s30, %s46_s30 }
   0xc   :  { %p2553_p3 = scmp.ne.s32.totalorder %s46_s30, %s2552_s24  ;;  %p2558_p5 = scmp.lt.s32.totalorder %s2552_s24, %s2552_s24 }
   0xe   :  { %p2559_p6 = por %p2558_p5, %p2557_p4 }
  0x10   :  { %p2560_p7 = pnand %p2559_p6, %p2553_p3 }
  0x12   :  { %2563 = shalt.err (!%p2560_p7)
}
  0x13   :  { %s2684_s25 = smov 32   ;;  %s2685_s26 = smov 2  }
  0x14   :  { %51 = dma.hbm_to_vmem [thread:$0]  %s3320_s3, 64, %s46_s30, [#allocation7], %s2684_s25, %s2684_s25, %s2685_s26  }
  0x15   :  { %s2564_s17 = scalar_lea.hbm %s3319_s2, 64 }
  0x16   :  { %p2565_p8 = scmp.ne.s32.totalorder %s3319_s2, %s2564_s17  ;;  %p2568_p9 = scmp.lt.u32.totalorder %s2564_s17, %s3319_s2 }
  0x18   :  { %p2570_p10 = pnand %p2568_p9, %p2565_p8 }
  0x1a   :  { %2573 = shalt.err (!%p2570_p10)
}
  0x1b   :  { %s2574_s22 = scalar_lea.vmem %s2773_s16, 64  ;;  %p2579_p12 = scmp.lt.s32.totalorder %s2773_s16, %s2773_s16 }
  0x1c   :  { %p2575_p11 = scmp.ne.s32.totalorder %s2773_s16, %s2574_s22  ;;  %p2580_p13 = scmp.lt.s32.totalorder %s2574_s22, %s2574_s22 }
  0x1e   :  { %p2581_p0 = por %p2580_p13, %p2579_p12 }
  0x20   :  { %p2582_p1 = pnand %p2581_p0, %p2575_p11 }
  0x22   :  { %2585 = shalt.err (!%p2582_p1)
}
  0x23   :  { %39 = dma.hbm_to_vmem [thread:$0]  %s3319_s2, 64, %s2773_s16, [#allocation4], %s2684_s25, %s2684_s25, %s2685_s26  }
  0x24   :  { %s2686_s23 = smov [#allocation8]   ;;  %s2586_s29 = scalar_lea.hbm %s3321_s4, 128 }
  0x25   :  { %s57_s24 = sshll.u32 %s2686_s23, 4  ;;  %p2587_p2 = scmp.ne.s32.totalorder %s3321_s4, %s2586_s29  ;;  %s58_s24 = int_to_ptr.vmem [resolvable:$true] %s57_s24 }
  0x26   :  { %p2590_p3 = scmp.lt.u32.totalorder %s2586_s29, %s3321_s4 }
  0x28   :  { %p2592_p4 = pnand %p2590_p3, %p2587_p2 }
  0x2a   :  { %2595 = shalt.err (!%p2592_p4)
}
  0x2b   :  { %s2596_s20 = scalar_lea.vmem %s58_s24, 128  ;;  %p2601_p6 = scmp.lt.s32.totalorder %s58_s24, %s58_s24 }
  0x2c   :  { %p2597_p5 = scmp.ne.s32.totalorder %s58_s24, %s2596_s20  ;;  %p2602_p7 = scmp.lt.s32.totalorder %s2596_s20, %s2596_s20 }
  0x2e   :  { %p2603_p8 = por %p2602_p7, %p2601_p6 }
  0x30   :  { %p2604_p9 = pnand %p2603_p8, %p2597_p5 }
  0x32   :  { %2607 = shalt.err (!%p2604_p9)
}
  0x33   :  { %s2687_s2 = smov 64   ;;  %s2688_s16 = smov 4  }
  0x34   :  { %63 = dma.hbm_to_vmem [thread:$0]  %s3321_s4, 128, %s58_s24, [#allocation7], %s2687_s2, %s2687_s2, %s2688_s16  }
  0x35   :  { %2674 = dma.done.wait [#allocation4], 64  }
  0x36   :  { %2675 = vsyncadd [#allocation4], 4294967232 }
  0x37   :  { %2676 = dma.done.wait [#allocation7], 192  }
  0x38   :  { %2677 = vsyncadd [#allocation7], 4294967104  ;;  %v2689_v0 = vmov 0   ;;  %v88_v1 = vld [vmem:[%s3317_s0] sm:$0xff]  ;;  %v103_v3 = vld [vmem:[%s3318_s1 + $0x8] sm:$0xff]  ;;  %v2690_v9 = vmov 0.0   ;;  %v90_v10 = vlaneseq }
  0x39   :  { %2397 = vset.pattern.permute.xlu0 %v2689_v0  ;;  %v102_v2 = vld [vmem:[%s3318_s1] sm:$0xff]  ;;  %v104_v4 = vld [vmem:[%s3318_s1 + $0x10] sm:$0xff]  ;;  %v105_v5 = vld [vmem:[%s3318_s1 + $0x18] sm:$0xff]  ;;  %2167 = vmatprep.subr.bf16.mxu1 %v2690_v9  ;;  %vm106_vm0 = vcmask 261120   ;;  %vm2691_vm3 = vmmov 0   ;;  %vm217_vm4 = vcmask 130048  }
  0x3a   :  { %93 = vperm.xlu0 %2397, %v88_v1   ;;  %v89_v6 = vld [vmem:[%s3317_s0 + $0x8] sm:$0xff]  ;;  %v2373_v7 = vpack.c.bf16 %v103_v3, %v102_v2  ;;  %v2377_v8 = vpack.c.bf16 %v105_v5, %v104_v4  ;;  %v91_v11 = vand.u32 127, %v90_v10  ;;  %v2398_v16 = vld [vmem:[#allocation8] sm:$0xff]   ;;  %2169 = vmatprep.mubr.msk.bf16.mxu1 %vm2691_vm3, %v2690_v9  ;;  %v262_v22 = vld [vmem:[#allocation3] sm:$0x3]  ;;  %vm507_vm5 = vcmask 254976  }
  0x3b   :  { %2168 = vmatpush3.bf16.msra.mxu1 %v2398_v16  ;;  %v2856_v19 = vld [vmem:[%s3322_s5] sm:$0xff]   ;;  %v2862_v21 = vld [vmem:[%s3322_s5 + $0x8] sm:$0xff]   ;;  %v268_v23 = vpack.c.bf16 %v262_v22, %v262_v22  ;;  %v265_v37 = vld [vmem:[#allocation6] sm:$0x3]  ;;  %vm1881_vm6 = vcmask 261126  }
  0x3c   :  { %2374 = vmatprep.subr.bf16.mxu0 %v2373_v7  ;;  %2173 = vmatprep.subr.bf16.mxu1 %v2690_v9  ;;  %v2019_v26 = vld [vmem:[%s3323_s6] ss:$0 sm:$0xff]  ;;  %v2900_v50 = vld [vmem:[%s3325_s8 + $0x8] sm:$0xff]   ;;  %v264_v51 = vld [vmem:[#allocation3 + $0x2] sm:$0x3] }
  0x3d   :  { %2376 = vmatpush3.bf16.msra.mxu0 %v2373_v7  ;;  %v2889_v48 = vld [vmem:[%s3325_s8] sm:$0xff]   ;;  %v2907_v52 = vld [vmem:[%s3324_s7 + $0x8] sm:$0xff]   ;;  %v354_v53 = vpack.c.bf16 %v264_v51, %v264_v51 }
  0x3e   :  { %96 = vperm.xlu0 %2397, %v89_v6   ;;  %2378 = vmatprep.subr.bf16.mxu0 %v2377_v8  ;;  %v2894_v49 = vld [vmem:[%s3324_s7] sm:$0xff]  }
  0x3f   :  { %v2940_v63 = vld [vmem:[%s3326_s9] ss:$0 sm:$0xff] }
  0x41   :  { %2380 = vmatpush3.bf16.msra.mxu0 %v2377_v8 }
  0x42   :  { %2181 = vmatprep.subr.bf16.mxu0 %v2690_v9 }
  0xb9   :  { %v94_v12 = vpop.permute.xlu0 %93 }
  0xba   :  { %vm98_vm1 = vcmp.eq.s32.totalorder %v91_v11, %v94_v12 }
  0xbb   :  { %v100_v13 = vsel %vm98_vm1, 1.0, %v2690_v9 }
  0xbc   :  { %2164 = vmatprep.mubr.msk.f32.mxu0 %vm106_vm0, %v100_v13 }
  0xbd   :  { %v97_v14 = vpop.permute.xlu0 %96 }
  0xbe   :  { %vm99_vm2 = vcmp.eq.s32.totalorder %v91_v11, %v97_v14 }
  0xbf   :  { %v101_v15 = vsel %vm99_vm2, 1.0, %v2690_v9 }
  0xc0   :  { %2165 = vmatmul.mubr.msk.f32.vlgmr.msra.gmra.mrb[0].mxu0 %vm106_vm0, %v101_v15  ;;  %v267_v15 = vld [vmem:[#allocation6 + $0x2] sm:$0x3] }
  0xc1   :  { %2185 = vmatprep.mubr.msk.bf16.mxu0 %vm2691_vm3, %v2690_v9  ;;  %2182 = vmatpush3.bf16.msra.mxu0 %v2889_v48 }
  0xc2   :  { %2183 = vmatprep.subr.bf16.mxu0 %v2690_v9 }
  0xc5   :  { %2184 = vmatpush3.bf16.msra.mxu0 %v2900_v50 }
  0xc6   :  { %2197 = vmatprep.subr.bf16.mxu0 %v2690_v9 }
  0xc8   :  { %2186 = vmatmul.mubr.msk.bf16.vlgmr.msra.gmra.mrb[4].mxu0 %vm106_vm0, %v354_v53 }
  0xc9   :  { %2198 = vmatpush3.bf16.msra.mxu0 %v2856_v19  ;;  %2201 = vmatprep.mubr.msk.bf16.mxu0 %vm2691_vm3, %v2690_v9 }
  0xca   :  { %2199 = vmatprep.subr.bf16.mxu0 %v2690_v9 }
  0xcd   :  { %2200 = vmatpush3.bf16.msra.mxu0 %v2862_v21 }
  0xce   :  { %2213 = vmatprep.subr.bf16.mxu0 %v2690_v9 }
 0x193   :  { %v2166_v17 = vpop.f32.mrb[0].mxu0 }
 0x194   :  { %v179_v18 = vpop.f32.mrb[1].mxu0 }
 0x195   :  { %v204_v20 = vpack.c.bf16 %v2166_v17, %v179_v18 }
 0x197   :  { %2170 = vmatmul.mubr.msk.bf16.vlgmr.msra.gmra.mrb[0].mxu1 %vm217_vm4, %v204_v20 }
 0x198   :  { %2174 = vmatpush3.bf16.msra.mxu1 %v2856_v19  ;;  %2177 = vmatprep.mubr.msk.bf16.mxu1 %vm2691_vm3, %v2690_v9 }
 0x199   :  { %2175 = vmatprep.subr.bf16.mxu1 %v2690_v9 }
 0x19b   :  { %v404_v58 = vpop.f32.mrb[4].mxu0 }
 0x19c   :  { %2176 = vmatpush3.bf16.msra.mxu1 %v2862_v21  ;;  %v2187_v59 = vpop.f32.mrb[5].mxu0 }
 0x19d   :  { %2189 = vmatprep.subr.bf16.mxu1 %v2690_v9  ;;  %v407_v60 = vpop.f32.mrb[6].mxu0 }
 0x19e   :  { %v2188_v61 = vpop.f32.mrb[7].mxu0 }
 0x19f   :  { %2178 = vmatmul.mubr.msk.bf16.vlgmr.msra.gmra.mrb[4].mxu1 %vm106_vm0, %v268_v23 }
 0x1a0   :  { %2193 = vmatprep.mubr.msk.bf16.mxu1 %vm2691_vm3, %v2690_v9  ;;  %2190 = vmatpush3.bf16.msra.mxu1 %v2894_v49 }
 0x1a1   :  { %2191 = vmatprep.subr.bf16.mxu1 %v2690_v9 }
 0x1a4   :  { %2192 = vmatpush3.bf16.msra.mxu1 %v2907_v52 }
 0x1a5   :  { %2205 = vmatprep.subr.bf16.mxu1 %v2690_v9 }
 0x26a   :  { %v255_v24 = vpop.f32.mrb[0].mxu1 }
 0x26b   :  { %v2171_v25 = vpop.f32.mrb[1].mxu1  ;;  %v2877_v30 = vadd.f32 %v2019_v26, %v255_v24 }
 0x26c   :  { %v258_v27 = vpop.f32.mrb[2].mxu1 }
 0x26d   :  { %v2875_v28 = vadd.f32 %v2019_v26, %v258_v27  ;;  %v2172_v29 = vpop.f32.mrb[3].mxu1 }
 0x272   :  { %v318_v31 = vpop.f32.mrb[4].mxu1 }
 0x273   :  { %v324_v32 = vadd.f32 %v318_v31, %v2877_v30  ;;  %v2179_v33 = vpop.f32.mrb[5].mxu1 }
 0x274   :  { %v321_v34 = vpop.f32.mrb[6].mxu1 }
 0x275   :  { %v2180_v35 = vpop.f32.mrb[7].mxu1  ;;  %2407 = vtanh.f32 %v324_v32  ;;  %v2025_v38 = vmul.f32 -1.442695, %v324_v32 }
 0x277   :  { %2409 = vpow2.f32 %v2025_v38 }
 0x27f   :  { %v2408_v36 = vpop.eup %2407 }
 0x280   :  { %338 = vrot.lane.b32.xlu1 %v2408_v36, %s2687_s2 }
 0x281   :  { %v2410_v39 = vpop.eup %2409 }
 0x282   :  { %v328_v40 = vadd.f32 1.0, %v2410_v39 }
 0x284   :  { %333 = vrot.lane.b32.xlu1 %v265_v37, %s2684_s25  ;;  %2411 = vrcp.f32 %v328_v40 }
 0x28e   :  { %v2412_v41 = vpop.eup %2411 }
 0x2f2   :  { %v339_v42 = vpop.permute.xlu1 %338 }
 0x2f3   :  { %v341_v43 = vmul.f32 %v2412_v41, %v339_v42 }
 0x2f5   :  { %343 = vrot.lane.b32.xlu0 %v341_v43, %s2684_s25 }
 0x2f6   :  { %v334_v44 = vpop.permute.xlu1 %333 }
 0x2f7   :  { %v336_v45 = vmul.f32 %v2412_v41, %v334_v44 }
 0x367   :  { %v344_v46 = vpop.permute.xlu0 %343 }
 0x368   :  { %v2883_v47 = vadd.f32 %v344_v46, %v336_v45 }
 0x36a   :  { %2413 = vtanh.f32 %v2883_v47  ;;  %v561_v33 = vrot.slane %v2883_v47, 6 }
 0x374   :  { %v2414_v54 = vpop.eup %2413 }
 0x375   :  { %349 = vrot.lane.b32.xlu1 %v2414_v54, %s2687_s2 }
 0x3e7   :  { %v350_v55 = vpop.permute.xlu1 %349 }
 0x3e8   :  { %v352_v56 = vmul.f32 %v2412_v41, %v350_v55 }
 0x3ea   :  { %v353_v57 = vpack.c.bf16 %v352_v56, %v352_v56 }
 0x3ec   :  { %411 = vrot.lane.b32.xlu0 %v353_v57, %s2684_s25 }
 0x45e   :  { %v412_v62 = vpop.permute.xlu0 %411 }
 0x45f   :  { %2194 = vmatmul.mubr.msk.bf16.vlgmr.msra.gmra.mrb[8].mxu1 %vm106_vm0, %v412_v62  ;;  %2202 = vmatmul.mubr.msk.bf16.vlgmr.msra.gmra.mrb[8].mxu0 %vm106_vm0, %v412_v62 }
 0x460   :  { %2206 = vmatpush3.bf16.msra.mxu1 %v2889_v48  ;;  %2214 = vmatpush3.bf16.msra.mxu0 %v2894_v49 }
 0x461   :  { %2207 = vmatprep.subr.bf16.mxu1 %v2690_v9  ;;  %2215 = vmatprep.subr.bf16.mxu0 %v2690_v9 }
 0x462   :  { %2209 = vmatprep.mubr.msk.bf16.mxu1 %vm2691_vm3, %v2690_v9  ;;  %2217 = vmatprep.mubr.msk.bf16.mxu0 %vm2691_vm3, %v2690_v9 }
 0x464   :  { %2208 = vmatpush3.bf16.msra.mxu1 %v2900_v50  ;;  %2216 = vmatpush3.bf16.msra.mxu0 %v2907_v52 }
 0x465   :  { %2221 = vmatprep.subr.bf16.mxu1 %v2690_v9  ;;  %2229 = vmatprep.subr.bf16.mxu0 %v2690_v9 }
 0x532   :  { %v462_v0 = vpop.f32.mrb[8].mxu1  ;;  %v543_v1 = vpop.f32.mrb[8].mxu0 }
 0x533   :  { %v463_v2 = vadd.f32 %v462_v0, %v404_v58  ;;  %v550_v3 = vrot.slane %v543_v1, 6  ;;  %v2195_v4 = vpop.f32.mrb[9].mxu1  ;;  %v2203_v5 = vpop.f32.mrb[9].mxu0 }
 0x534   :  { %v465_v6 = vpop.f32.mrb[10].mxu1  ;;  %v546_v7 = vpop.f32.mrb[10].mxu0 }
 0x535   :  { %v474_v8 = vadd.f32 %v2940_v63, %v463_v2  ;;  %v552_v10 = vadd.f32 %v550_v3, %v2877_v30  ;;  %v2196_v11 = vpop.f32.mrb[11].mxu1  ;;  %v2204_v12 = vpop.f32.mrb[11].mxu0 }
 0x537   :  { %2415 = vtanh.f32 %v474_v8  ;;  %v2033_v16 = vmul.f32 -1.442695, %v474_v8  ;;  %v2035_v17 = vmul.f32 -1.442695, %v552_v10 }
 0x538   :  { %2417 = vtanh.f32 %v552_v10 }
 0x539   :  { %2419 = vpow2.f32 %v2033_v16 }
 0x53a   :  { %2421 = vpow2.f32 %v2035_v17 }
 0x541   :  { %v2416_v13 = vpop.eup %2415 }
 0x542   :  { %v2418_v14 = vpop.eup %2417  ;;  %488 = vrot.lane.b32.xlu1 %v2416_v13, %s2687_s2 }
 0x543   :  { %565 = vrot.lane.b32.xlu0 %v2418_v14, %s2687_s2  ;;  %v2420_v18 = vpop.eup %2419 }
 0x544   :  { %v2422_v20 = vpop.eup %2421  ;;  %v478_v22 = vadd.f32 1.0, %v2420_v18 }
 0x545   :  { %v556_v23 = vadd.f32 1.0, %v2422_v20 }
 0x546   :  { %483 = vrot.lane.b32.xlu1 %v267_v15, %s2684_s25  ;;  %2423 = vrcp.f32 %v478_v22 }
 0x547   :  { %2425 = vrcp.f32 %v556_v23 }
 0x550   :  { %v2424_v24 = vpop.eup %2423 }
 0x551   :  { %v2426_v26 = vpop.eup %2425 }
 0x552   :  { %v563_v35 = vmul.f32 %v2426_v26, %v561_v33 }
 0x5b4   :  { %v489_v25 = vpop.permute.xlu1 %488 }
 0x5b5   :  { %v566_v27 = vpop.permute.xlu0 %565  ;;  %v491_v29 = vmul.f32 %v2424_v24, %v489_v25 }
 0x5b6   :  { %v568_v31 = vmul.f32 %v2426_v26, %v566_v27 }
 0x5b7   :  { %493 = vrot.lane.b32.xlu0 %v491_v29, %s2684_s25 }
 0x5b8   :  { %570 = vrot.lane.b32.xlu1 %v568_v31, %s2684_s25  ;;  %v484_v32 = vpop.permute.xlu1 %483 }
 0x5b9   :  { %v486_v34 = vmul.f32 %v2424_v24, %v484_v32 }
 0x629   :  { %v494_v36 = vpop.permute.xlu0 %493 }
 0x62a   :  { %v571_v37 = vpop.permute.xlu1 %570  ;;  %v2950_v38 = vadd.f32 %v494_v36, %v486_v34 }
 0x62b   :  { %v2952_v39 = vadd.f32 %v571_v37, %v563_v35 }
 0x62c   :  { %2427 = vtanh.f32 %v2950_v38 }
 0x62d   :  { %2429 = vtanh.f32 %v2952_v39  ;;  %v757_v29 = vrot.slane %v2952_v39, 6 }
 0x636   :  { %v2428_v40 = vpop.eup %2427 }
 0x637   :  { %v2430_v41 = vpop.eup %2429  ;;  %499 = vrot.lane.b32.xlu0 %v2428_v40, %s2687_s2 }
 0x638   :  { %576 = vrot.lane.b32.xlu1 %v2430_v41, %s2687_s2 }
 0x6a9   :  { %v500_v42 = vpop.permute.xlu0 %499 }
 0x6aa   :  { %v577_v43 = vpop.permute.xlu1 %576  ;;  %v2958_v44 = vmul.f32 %v2424_v24, %v500_v42 }
 0x6ab   :  { %v579_v45 = vmul.f32 %v2426_v26, %v577_v43 }
 0x6ac   :  { %v581_v46 = vpack.c.bf16 %v2958_v44, %v2958_v44 }
 0x6ad   :  { %v580_v47 = vpack.c.bf16 %v579_v45, %v579_v45 }
 0x6ae   :  { %583 = vrot.lane.b32.xlu0 %v581_v46, %s2684_s25 }
 0x6af   :  { %v629_v51 = vrot.slane %v580_v47, 1 }
 0x6b1   :  { %630 = vrot.lane.b32.xlu1 %v629_v51, %s2684_s25 }
 0x720   :  { %v584_v53 = vpop.permute.xlu0 %583 }
 0x721   :  { %2210 = vmatmul.mubr.msk.bf16.vlgmr.msra.gmra.mrb[12].mxu1 %vm106_vm0, %v584_v53 }
 0x722   :  { %2222 = vmatpush3.bf16.msra.mxu1 %v2856_v19  ;;  %2225 = vmatprep.mubr.msk.bf16.mxu1 %vm2691_vm3, %v2690_v9 }
 0x723   :  { %v631_v54 = vpop.permute.xlu1 %630  ;;  %2223 = vmatprep.subr.bf16.mxu1 %v2690_v9 }
 0x724   :  { %2218 = vmatmul.mubr.msk.bf16.vlgmr.msra.gmra.mrb[12].mxu0 %vm106_vm0, %v631_v54 }
 0x725   :  { %2230 = vmatpush3.bf16.msra.mxu0 %v2889_v48  ;;  %2233 = vmatprep.mubr.msk.bf16.mxu0 %vm2691_vm3, %v2690_v9 }
 0x726   :  { %2224 = vmatpush3.bf16.msra.mxu1 %v2862_v21  ;;  %2231 = vmatprep.subr.bf16.mxu0 %v2690_v9 }
 0x727   :  { %2237 = vmatprep.subr.bf16.mxu1 %v2690_v9 }
 0x729   :  { %2226 = vmatmul.mubr.msk.bf16.vlgmr.msra.gmra.mrb[16].mxu1 %vm106_vm0, %v631_v54  ;;  %2232 = vmatpush3.bf16.msra.mxu0 %v2900_v50 }
 0x72a   :  { %2245 = vmatprep.subr.bf16.mxu0 %v2690_v9  ;;  %2238 = vmatpush3.bf16.msra.mxu1 %v2894_v49 }
 0x72b   :  { %2239 = vmatprep.subr.bf16.mxu1 %v2690_v9  ;;  %2241 = vmatprep.mubr.msk.bf16.mxu1 %vm2691_vm3, %v2690_v9 }
 0x72e   :  { %2240 = vmatpush3.bf16.msra.mxu1 %v2907_v52 }
 0x72f   :  { %2253 = vmatprep.subr.bf16.mxu1 %v2690_v9 }
 0x7f4   :  { %v622_v55 = vpop.f32.mrb[12].mxu1 }
 0x7f5   :  { %v2211_v56 = vpop.f32.mrb[13].mxu1 }
 0x7f6   :  { %v625_v57 = vpop.f32.mrb[14].mxu1 }
 0x7f7   :  { %v669_v58 = vpop.f32.mrb[12].mxu0  ;;  %v2212_v59 = vpop.f32.mrb[15].mxu1 }
 0x7f8   :  { %v670_v60 = vadd.f32 %v669_v58, %v622_v55  ;;  %v2219_v61 = vpop.f32.mrb[13].mxu0 }
 0x7f9   :  { %v672_v62 = vpop.f32.mrb[14].mxu0 }
 0x7fa   :  { %v675_v0 = vadd.f32 %v2940_v63, %v670_v60  ;;  %v2220_v1 = vpop.f32.mrb[15].mxu0 }
 0x7fc   :  { %2431 = vtanh.f32 %v675_v0  ;;  %v739_v2 = vpop.f32.mrb[16].mxu1  ;;  %v2038_v11 = vmul.f32 -1.442695, %v675_v0 }
 0x7fd   :  { %v746_v3 = vrot.slane %v739_v2, 4  ;;  %v2227_v4 = vpop.f32.mrb[17].mxu1 }
 0x7fe   :  { %v742_v5 = vpop.f32.mrb[18].mxu1 }
 0x7ff   :  { %v748_v6 = vadd.f32 %v746_v3, %v2877_v30  ;;  %v2228_v7 = vpop.f32.mrb[19].mxu1 }
 0x801   :  { %2433 = vtanh.f32 %v748_v6  ;;  %v2040_v12 = vmul.f32 -1.442695, %v748_v6 }
 0x802   :  { %2435 = vpow2.f32 %v2038_v11 }
 0x803   :  { %2437 = vpow2.f32 %v2040_v12 }
 0x806   :  { %v2432_v8 = vpop.eup %2431 }
 0x807   :  { %685 = vrot.lane.b32.xlu0 %v2432_v8, %s2687_s2 }
 0x80b   :  { %v2434_v10 = vpop.eup %2433 }
 0x80c   :  { %761 = vrot.lane.b32.xlu1 %v2434_v10, %s2687_s2  ;;  %v2436_v13 = vpop.eup %2435 }
 0x80d   :  { %v679_v14 = vadd.f32 1.0, %v2436_v13  ;;  %v2438_v15 = vpop.eup %2437 }
 0x80e   :  { %v752_v16 = vadd.f32 1.0, %v2438_v15 }
 0x80f   :  { %2439 = vrcp.f32 %v679_v14 }
 0x810   :  { %2441 = vrcp.f32 %v752_v16 }
 0x819   :  { %v2440_v17 = vpop.eup %2439 }
 0x81a   :  { %v2442_v22 = vpop.eup %2441  ;;  %v683_v25 = vmul.f32 %v2440_v17, %v2950_v38 }
 0x81b   :  { %v759_v31 = vmul.f32 %v2442_v22, %v757_v29 }
 0x879   :  { %v686_v18 = vpop.permute.xlu0 %685 }
 0x87a   :  { %v688_v20 = vmul.f32 %v2440_v17, %v686_v18 }
 0x87c   :  { %690 = vrot.lane.b32.xlu0 %v688_v20, %s2684_s25 }
 0x87e   :  { %v762_v23 = vpop.permute.xlu1 %761 }
 0x87f   :  { %v764_v24 = vmul.f32 %v2442_v22, %v762_v23 }
 0x881   :  { %766 = vrot.lane.b32.xlu1 %v764_v24, %s2684_s25 }
 0x8ee   :  { %v691_v26 = vpop.permute.xlu0 %690 }
 0x8ef   :  { %v2992_v27 = vadd.f32 %v691_v26, %v683_v25 }
 0x8f1   :  { %2443 = vtanh.f32 %v2992_v27 }
 0x8f3   :  { %v767_v32 = vpop.permute.xlu1 %766 }
 0x8f4   :  { %v2996_v33 = vadd.f32 %v767_v32, %v759_v31 }
 0x8f6   :  { %2445 = vtanh.f32 %v2996_v33 }
 0x8fb   :  { %v2444_v34 = vpop.eup %2443 }
 0x8fc   :  { %696 = vrot.lane.b32.xlu0 %v2444_v34, %s2687_s2 }
 0x900   :  { %v2446_v35 = vpop.eup %2445 }
 0x901   :  { %772 = vrot.lane.b32.xlu1 %v2446_v35, %s2687_s2 }
 0x96e   :  { %v697_v36 = vpop.permute.xlu0 %696 }
 0x96f   :  { %v3001_v37 = vmul.f32 %v2440_v17, %v697_v36  ;;  %v953_v17 = vrot.slane %v2996_v33, 6 }
 0x971   :  { %v777_v38 = vpack.c.bf16 %v3001_v37, %v3001_v37 }
 0x973   :  { %779 = vrot.lane.b32.xlu0 %v777_v38, %s2684_s25  ;;  %v773_v39 = vpop.permute.xlu1 %772 }
 0x974   :  { %v775_v40 = vmul.f32 %v2442_v22, %v773_v39 }
 0x976   :  { %v776_v41 = vpack.c.bf16 %v775_v40, %v775_v40 }
 0x978   :  { %v825_v42 = vrot.slane %v776_v41, 2 }
 0x97a   :  { %826 = vrot.lane.b32.xlu1 %v825_v42, %s2684_s25 }
 0x9e5   :  { %v780_v43 = vpop.permute.xlu0 %779 }
 0x9e6   :  { %2234 = vmatmul.mubr.msk.bf16.vlgmr.msra.gmra.mrb[16].mxu0 %vm106_vm0, %v780_v43 }
 0x9e7   :  { %2246 = vmatpush3.bf16.msra.mxu0 %v2856_v19  ;;  %2249 = vmatprep.mubr.msk.bf16.mxu0 %vm2691_vm3, %v2690_v9 }
 0x9e8   :  { %2247 = vmatprep.subr.bf16.mxu0 %v2690_v9 }
 0x9eb   :  { %2248 = vmatpush3.bf16.msra.mxu0 %v2862_v21 }
 0x9ec   :  { %v827_v45 = vpop.permute.xlu1 %826  ;;  %2261 = vmatprep.subr.bf16.mxu0 %v2690_v9 }
 0x9ed   :  { %2242 = vmatmul.mubr.msk.bf16.vlgmr.msra.gmra.mrb[20].mxu1 %vm106_vm0, %v827_v45 }
 0x9ee   :  { %2250 = vmatmul.mubr.msk.bf16.vlgmr.msra.gmra.mrb[20].mxu0 %vm106_vm0, %v827_v45  ;;  %2254 = vmatpush3.bf16.msra.mxu1 %v2889_v48 }
 0x9ef   :  { %2262 = vmatpush3.bf16.msra.mxu0 %v2894_v49  ;;  %2255 = vmatprep.subr.bf16.mxu1 %v2690_v9 }
 0x9f0   :  { %2263 = vmatprep.subr.bf16.mxu0 %v2690_v9  ;;  %2257 = vmatprep.mubr.msk.bf16.mxu1 %vm2691_vm3, %v2690_v9 }
 0x9f1   :  { %2265 = vmatprep.mubr.msk.bf16.mxu0 %vm2691_vm3, %v2690_v9 }
 0x9f2   :  { %2256 = vmatpush3.bf16.msra.mxu1 %v2900_v50 }
 0x9f3   :  { %2264 = vmatpush3.bf16.msra.mxu0 %v2907_v52  ;;  %2269 = vmatprep.subr.bf16.mxu1 %v2690_v9 }
 0x9f4   :  { %2277 = vmatprep.subr.bf16.mxu0 %v2690_v9 }
 0xab9   :  { %v818_v46 = vpop.f32.mrb[16].mxu0 }
 0xaba   :  { %v2235_v47 = vpop.f32.mrb[17].mxu0 }
 0xabb   :  { %v821_v51 = vpop.f32.mrb[18].mxu0 }
 0xabc   :  { %v2236_v53 = vpop.f32.mrb[19].mxu0 }
 0xac0   :  { %v865_v54 = vpop.f32.mrb[20].mxu1 }
 0xac1   :  { %v866_v55 = vadd.f32 %v865_v54, %v818_v46  ;;  %v935_v56 = vpop.f32.mrb[20].mxu0  ;;  %v2243_v57 = vpop.f32.mrb[21].mxu1 }
 0xac2   :  { %v942_v58 = vrot.slane %v935_v56, 2  ;;  %v2251_v59 = vpop.f32.mrb[21].mxu0  ;;  %v868_v60 = vpop.f32.mrb[22].mxu1 }
 0xac3   :  { %v871_v61 = vadd.f32 %v2940_v63, %v866_v55  ;;  %v938_v62 = vpop.f32.mrb[22].mxu0  ;;  %v2244_v0 = vpop.f32.mrb[23].mxu1 }
 0xac4   :  { %v944_v1 = vadd.f32 %v942_v58, %v2877_v30  ;;  %v2252_v2 = vpop.f32.mrb[23].mxu0 }
 0xac5   :  { %2447 = vtanh.f32 %v871_v61  ;;  %v2043_v5 = vmul.f32 -1.442695, %v871_v61 }
 0xac6   :  { %2449 = vtanh.f32 %v944_v1  ;;  %v2045_v6 = vmul.f32 -1.442695, %v944_v1 }
 0xac7   :  { %2451 = vpow2.f32 %v2043_v5 }
 0xac8   :  { %2453 = vpow2.f32 %v2045_v6 }
 0xacf   :  { %v2448_v3 = vpop.eup %2447 }
 0xad0   :  { %v2450_v4 = vpop.eup %2449  ;;  %881 = vrot.lane.b32.xlu1 %v2448_v3, %s2687_s2 }
 0xad1   :  { %957 = vrot.lane.b32.xlu0 %v2450_v4, %s2687_s2  ;;  %v2452_v7 = vpop.eup %2451 }
 0xad2   :  { %v2454_v8 = vpop.eup %2453  ;;  %v875_v10 = vadd.f32 1.0, %v2452_v7 }
 0xad3   :  { %v948_v11 = vadd.f32 1.0, %v2454_v8 }
 0xad4   :  { %2455 = vrcp.f32 %v875_v10 }
 0xad5   :  { %2457 = vrcp.f32 %v948_v11 }
 0xade   :  { %v2456_v30 = vpop.eup %2455 }
 0xadf   :  { %v2458_v13 = vpop.eup %2457  ;;  %v879_v18 = vmul.f32 %v2456_v30, %v2992_v27 }
 0xae0   :  { %v955_v20 = vmul.f32 %v2458_v13, %v953_v17 }
 0xb42   :  { %v882_v12 = vpop.permute.xlu1 %881 }
 0xb43   :  { %v958_v14 = vpop.permute.xlu0 %957  ;;  %v884_v15 = vmul.f32 %v2456_v30, %v882_v12 }
 0xb44   :  { %v960_v16 = vmul.f32 %v2458_v13, %v958_v14 }
 0xb45   :  { %886 = vrot.lane.b32.xlu1 %v884_v15, %s2684_s25 }
 0xb46   :  { %962 = vrot.lane.b32.xlu0 %v960_v16, %s2684_s25 }
 0xbb7   :  { %v887_v22 = vpop.permute.xlu1 %886 }
 0xbb8   :  { %v963_v23 = vpop.permute.xlu0 %962  ;;  %v3036_v24 = vadd.f32 %v887_v22, %v879_v18 }
 0xbb9   :  { %v3038_v25 = vadd.f32 %v963_v23, %v955_v20 }
 0xbba   :  { %2459 = vtanh.f32 %v3036_v24 }
 0xbbb   :  { %2461 = vtanh.f32 %v3038_v25  ;;  %v1146_v12 = vrot.slane %v3038_v25, 6 }
 0xbc4   :  { %v2460_v26 = vpop.eup %2459 }
 0xbc5   :  { %v2462_v29 = vpop.eup %2461  ;;  %892 = vrot.lane.b32.xlu1 %v2460_v26, %s2687_s2 }
 0xbc6   :  { %968 = vrot.lane.b32.xlu0 %v2462_v29, %s2687_s2 }
 0xc37   :  { %v893_v31 = vpop.permute.xlu1 %892 }
 0xc38   :  { %v969_v32 = vpop.permute.xlu0 %968  ;;  %v3044_v27 = vmul.f32 %v2456_v30, %v893_v31 }
 0xc39   :  { %v971_v33 = vmul.f32 %v2458_v13, %v969_v32 }
 0xc3a   :  { %v973_v34 = vpack.c.bf16 %v3044_v27, %v3044_v27 }
 0xc3b   :  { %v972_v35 = vpack.c.bf16 %v971_v33, %v971_v33 }
 0xc3c   :  { %975 = vrot.lane.b32.xlu0 %v973_v34, %s2684_s25 }
 0xc3d   :  { %v1021_v36 = vrot.slane %v972_v35, 3 }
 0xc3f   :  { %1022 = vrot.lane.b32.xlu1 %v1021_v36, %s2684_s25 }
 0xcae   :  { %v976_v38 = vpop.permute.xlu0 %975 }
 0xcaf   :  { %2258 = vmatmul.mubr.msk.bf16.vlgmr.msra.gmra.mrb[24].mxu1 %vm106_vm0, %v976_v38 }
 0xcb0   :  { %2270 = vmatpush3.bf16.msra.mxu1 %v2856_v19  ;;  %2273 = vmatprep.mubr.msk.bf16.mxu1 %vm2691_vm3, %v2690_v9 }
 0xcb1   :  { %v1023_v39 = vpop.permute.xlu1 %1022  ;;  %2271 = vmatprep.subr.bf16.mxu1 %v2690_v9 }
 0xcb2   :  { %2266 = vmatmul.mubr.msk.bf16.vlgmr.msra.gmra.mrb[24].mxu0 %vm106_vm0, %v1023_v39 }
 0xcb3   :  { %2278 = vmatpush3.bf16.msra.mxu0 %v2889_v48  ;;  %2281 = vmatprep.mubr.msk.bf16.mxu0 %vm2691_vm3, %v2690_v9 }
 0xcb4   :  { %2272 = vmatpush3.bf16.msra.mxu1 %v2862_v21  ;;  %2279 = vmatprep.subr.bf16.mxu0 %v2690_v9 }
 0xcb5   :  { %2285 = vmatprep.subr.bf16.mxu1 %v2690_v9 }
 0xcb7   :  { %2274 = vmatmul.mubr.msk.bf16.vlgmr.msra.gmra.mrb[28].mxu1 %vm106_vm0, %v1023_v39  ;;  %2280 = vmatpush3.bf16.msra.mxu0 %v2900_v50 }
 0xcb8   :  { %2286 = vmatpush3.bf16.msra.mxu1 %v2894_v49  ;;  %2293 = vmatprep.subr.bf16.mxu0 %v2690_v9 }
 0xcb9   :  { %2287 = vmatprep.subr.bf16.mxu1 %v2690_v9  ;;  %2289 = vmatprep.mubr.msk.bf16.mxu1 %vm2691_vm3, %v2690_v9 }
 0xcbc   :  { %2288 = vmatpush3.bf16.msra.mxu1 %v2907_v52 }
 0xcbd   :  { %2301 = vmatprep.subr.bf16.mxu1 %v2690_v9 }
 0xd82   :  { %v1014_v40 = vpop.f32.mrb[24].mxu1 }
 0xd83   :  { %v2259_v41 = vpop.f32.mrb[25].mxu1 }
 0xd84   :  { %v1017_v42 = vpop.f32.mrb[26].mxu1 }
 0xd85   :  { %v1061_v43 = vpop.f32.mrb[24].mxu0  ;;  %v2260_v45 = vpop.f32.mrb[27].mxu1 }
 0xd86   :  { %v1062_v46 = vadd.f32 %v1061_v43, %v1014_v40  ;;  %v2267_v47 = vpop.f32.mrb[25].mxu0 }
 0xd87   :  { %v1064_v51 = vpop.f32.mrb[26].mxu0 }
 0xd88   :  { %v1067_v53 = vadd.f32 %v2940_v63, %v1062_v46  ;;  %v2268_v54 = vpop.f32.mrb[27].mxu0 }
 0xd8a   :  { %2463 = vtanh.f32 %v1067_v53  ;;  %v1131_v55 = vpop.f32.mrb[28].mxu1  ;;  %v2048_v62 = vmul.f32 -1.442695, %v1067_v53 }
 0xd8b   :  { %v1137_v56 = vadd.f32 %v1131_v55, %v2875_v28  ;;  %v2275_v57 = vpop.f32.mrb[29].mxu1 }
 0xd8c   :  { %v1134_v58 = vpop.f32.mrb[30].mxu1 }
 0xd8d   :  { %2465 = vtanh.f32 %v1137_v56  ;;  %v2276_v59 = vpop.f32.mrb[31].mxu1  ;;  %v2050_v0 = vmul.f32 -1.442695, %v1137_v56 }
 0xd8e   :  { %2467 = vpow2.f32 %v2048_v62 }
 0xd8f   :  { %2469 = vpow2.f32 %v2050_v0 }
 0xd94   :  { %v2464_v60 = vpop.eup %2463 }
 0xd95   :  { %1077 = vrot.lane.b32.xlu0 %v2464_v60, %s2687_s2 }
 0xd97   :  { %v2466_v61 = vpop.eup %2465 }
 0xd98   :  { %1150 = vrot.lane.b32.xlu1 %v2466_v61, %s2687_s2  ;;  %v2468_v1 = vpop.eup %2467 }
 0xd99   :  { %v2470_v2 = vpop.eup %2469  ;;  %v1071_v3 = vadd.f32 1.0, %v2468_v1 }
 0xd9a   :  { %v1141_v4 = vadd.f32 1.0, %v2470_v2 }
 0xd9b   :  { %2471 = vrcp.f32 %v1071_v3 }
 0xd9c   :  { %2473 = vrcp.f32 %v1141_v4 }
 0xda5   :  { %v2472_v5 = vpop.eup %2471 }
 0xda6   :  { %v2474_v8 = vpop.eup %2473  ;;  %v1075_v30 = vmul.f32 %v2472_v5, %v3036_v24 }
 0xda7   :  { %v1148_v15 = vmul.f32 %v2474_v8, %v1146_v12 }
 0xe07   :  { %v1078_v6 = vpop.permute.xlu0 %1077 }
 0xe08   :  { %v1080_v7 = vmul.f32 %v2472_v5, %v1078_v6 }
 0xe0a   :  { %1082 = vrot.lane.b32.xlu0 %v1080_v7, %s2684_s25  ;;  %v1151_v10 = vpop.permute.xlu1 %1150 }
 0xe0b   :  { %v1153_v11 = vmul.f32 %v2474_v8, %v1151_v10 }
 0xe0d   :  { %1155 = vrot.lane.b32.xlu1 %v1153_v11, %s2684_s25 }
 0xe7c   :  { %v1083_v13 = vpop.permute.xlu0 %1082 }
 0xe7d   :  { %v3079_v14 = vadd.f32 %v1083_v13, %v1075_v30 }
 0xe7f   :  { %2475 = vtanh.f32 %v3079_v14  ;;  %v1156_v16 = vpop.permute.xlu1 %1155 }
 0xe80   :  { %v3082_v17 = vadd.f32 %v1156_v16, %v1148_v15 }
 0xe82   :  { %2477 = vtanh.f32 %v3082_v17  ;;  %v1341_v10 = vrot.slane %v3082_v17, 6 }
 0xe89   :  { %v2476_v18 = vpop.eup %2475 }
 0xe8a   :  { %1088 = vrot.lane.b32.xlu0 %v2476_v18, %s2687_s2 }
 0xe8c   :  { %v2478_v20 = vpop.eup %2477 }
 0xe8d   :  { %1161 = vrot.lane.b32.xlu1 %v2478_v20, %s2687_s2 }
 0xefc   :  { %v1089_v22 = vpop.permute.xlu0 %1088 }
 0xefd   :  { %v3087_v23 = vmul.f32 %v2472_v5, %v1089_v22 }
 0xeff   :  { %v1162_v24 = vpop.permute.xlu1 %1161  ;;  %v1166_v25 = vpack.c.bf16 %v3087_v23, %v3087_v23 }
 0xf00   :  { %v1164_v26 = vmul.f32 %v2474_v8, %v1162_v24 }
 0xf01   :  { %1168 = vrot.lane.b32.xlu0 %v1166_v25, %s2684_s25 }
 0xf02   :  { %v1165_v29 = vpack.c.bf16 %v1164_v26, %v1164_v26 }
 0xf04   :  { %1214 = vrot.lane.b32.xlu1 %v1165_v29, %s2684_s25 }
 0xf73   :  { %v1169_v31 = vpop.permute.xlu0 %1168 }
 0xf74   :  { %2282 = vmatmul.mubr.msk.bf16.vlgmr.msra.gmra.mrb[28].mxu0 %vm106_vm0, %v1169_v31 }
 0xf75   :  { %2294 = vmatpush3.bf16.msra.mxu0 %v2856_v19  ;;  %2297 = vmatprep.mubr.msk.bf16.mxu0 %vm2691_vm3, %v2690_v9 }
 0xf76   :  { %2295 = vmatprep.subr.bf16.mxu0 %v2690_v9  ;;  %v1215_v32 = vpop.permute.xlu1 %1214 }
 0xf77   :  { %2290 = vmatmul.mubr.msk.bf16.vlgmr.msra.gmra.mrb[32].mxu1 %vm106_vm0, %v1215_v32 }
 0xf78   :  { %2302 = vmatpush3.bf16.msra.mxu1 %v2889_v48  ;;  %2305 = vmatprep.mubr.msk.bf16.mxu1 %vm2691_vm3, %v2690_v9 }
 0xf79   :  { %2296 = vmatpush3.bf16.msra.mxu0 %v2862_v21  ;;  %2303 = vmatprep.subr.bf16.mxu1 %v2690_v9 }
 0xf7a   :  { %2309 = vmatprep.subr.bf16.mxu0 %v2690_v9 }
 0xf7c   :  { %2298 = vmatmul.mubr.msk.bf16.vlgmr.msra.gmra.mrb[32].mxu0 %vm106_vm0, %v1215_v32  ;;  %2304 = vmatpush3.bf16.msra.mxu1 %v2900_v50 }
 0xf7d   :  { %2310 = vmatpush3.bf16.msra.mxu0 %v2894_v49  ;;  %2317 = vmatprep.subr.bf16.mxu1 %v2690_v9 }
 0xf7e   :  { %2311 = vmatprep.subr.bf16.mxu0 %v2690_v9  ;;  %2313 = vmatprep.mubr.msk.bf16.mxu0 %vm2691_vm3, %v2690_v9 }
 0xf81   :  { %2312 = vmatpush3.bf16.msra.mxu0 %v2907_v52 }
 0xf82   :  { %2325 = vmatprep.subr.bf16.mxu0 %v2690_v9 }
0x1047   :  { %v1207_v33 = vpop.f32.mrb[28].mxu0 }
0x1048   :  { %v2283_v34 = vpop.f32.mrb[29].mxu0 }
0x1049   :  { %v1210_v35 = vpop.f32.mrb[30].mxu0 }
0x104a   :  { %v2284_v36 = vpop.f32.mrb[31].mxu0  ;;  %v1253_v38 = vpop.f32.mrb[32].mxu1 }
0x104b   :  { %v1254_v39 = vadd.f32 %v1253_v38, %v1207_v33  ;;  %v2291_v40 = vpop.f32.mrb[33].mxu1 }
0x104c   :  { %v1256_v41 = vpop.f32.mrb[34].mxu1 }
0x104d   :  { %v1259_v42 = vadd.f32 %v2940_v63, %v1254_v39  ;;  %v2292_v43 = vpop.f32.mrb[35].mxu1 }
0x104f   :  { %2479 = vtanh.f32 %v1259_v42  ;;  %v1323_v45 = vpop.f32.mrb[32].mxu0  ;;  %v2053_v57 = vmul.f32 -1.442695, %v1259_v42 }
0x1050   :  { %v1330_v46 = vrot.slane %v1323_v45, 6  ;;  %v2299_v47 = vpop.f32.mrb[33].mxu0 }
0x1051   :  { %v1326_v51 = vpop.f32.mrb[34].mxu0 }
0x1052   :  { %v1332_v53 = vadd.f32 %v1330_v46, %v2875_v28  ;;  %v2300_v54 = vpop.f32.mrb[35].mxu0 }
0x1054   :  { %2481 = vtanh.f32 %v1332_v53  ;;  %v2055_v58 = vmul.f32 -1.442695, %v1332_v53 }
0x1055   :  { %2483 = vpow2.f32 %v2053_v57 }
0x1056   :  { %2485 = vpow2.f32 %v2055_v58 }
0x1059   :  { %v2480_v55 = vpop.eup %2479 }
0x105a   :  { %1269 = vrot.lane.b32.xlu0 %v2480_v55, %s2687_s2 }
0x105e   :  { %v2482_v56 = vpop.eup %2481 }
0x105f   :  { %1345 = vrot.lane.b32.xlu1 %v2482_v56, %s2687_s2  ;;  %v2484_v59 = vpop.eup %2483 }
0x1060   :  { %v1263_v60 = vadd.f32 1.0, %v2484_v59  ;;  %v2486_v61 = vpop.eup %2485 }
0x1061   :  { %v1336_v62 = vadd.f32 1.0, %v2486_v61 }
0x1062   :  { %2487 = vrcp.f32 %v1263_v60 }
0x1063   :  { %2489 = vrcp.f32 %v1336_v62 }
0x106c   :  { %v2488_v0 = vpop.eup %2487 }
0x106d   :  { %v2490_v3 = vpop.eup %2489  ;;  %v1267_v6 = vmul.f32 %v2488_v0, %v3079_v14 }
0x106e   :  { %v1343_v11 = vmul.f32 %v2490_v3, %v1341_v10 }
0x10cc   :  { %v1270_v1 = vpop.permute.xlu0 %1269 }
0x10cd   :  { %v1272_v2 = vmul.f32 %v2488_v0, %v1270_v1 }
0x10cf   :  { %1274 = vrot.lane.b32.xlu0 %v1272_v2, %s2684_s25 }
0x10d1   :  { %v1346_v4 = vpop.permute.xlu1 %1345 }
0x10d2   :  { %v1348_v5 = vmul.f32 %v2490_v3, %v1346_v4 }
0x10d4   :  { %1350 = vrot.lane.b32.xlu1 %v1348_v5, %s2684_s25 }
0x1141   :  { %v1275_v7 = vpop.permute.xlu0 %1274 }
0x1142   :  { %v3121_v8 = vadd.f32 %v1275_v7, %v1267_v6 }
0x1144   :  { %2491 = vtanh.f32 %v3121_v8 }
0x1146   :  { %v1351_v30 = vpop.permute.xlu1 %1350 }
0x1147   :  { %v3125_v12 = vadd.f32 %v1351_v30, %v1343_v11 }
0x1149   :  { %2493 = vtanh.f32 %v3125_v12  ;;  %v1537_v60 = vrot.slane %v3125_v12, 6 }
0x114e   :  { %v2492_v13 = vpop.eup %2491 }
0x114f   :  { %1280 = vrot.lane.b32.xlu0 %v2492_v13, %s2687_s2 }
0x1153   :  { %v2494_v15 = vpop.eup %2493 }
0x1154   :  { %1356 = vrot.lane.b32.xlu1 %v2494_v15, %s2687_s2  ;;  %v2535_v15 = vld [vmem:[%s3322_s5] sm:$0xff]  }
0x11c1   :  { %v1281_v14 = vpop.permute.xlu0 %1280 }
0x11c2   :  { %v3130_v16 = vmul.f32 %v2488_v0, %v1281_v14 }
0x11c4   :  { %v1361_v17 = vpack.c.bf16 %v3130_v16, %v3130_v16 }
0x11c6   :  { %v1357_v18 = vpop.permute.xlu1 %1356  ;;  %1363 = vrot.lane.b32.xlu0 %v1361_v17, %s2684_s25  ;;  %v2536_v17 = vld [vmem:[%s3325_s8] sm:$0xff]  }
0x11c7   :  { %v1359_v20 = vmul.f32 %v2490_v3, %v1357_v18  ;;  %v2537_v18 = vld [vmem:[%s3322_s5 + $0x8] sm:$0xff]  }
0x11c9   :  { %v1360_v22 = vpack.c.bf16 %v1359_v20, %v1359_v20  ;;  %v2538_v20 = vld [vmem:[%s3325_s8 + $0x8] sm:$0xff]  }
0x11cb   :  { %v1409_v24 = vrot.slane %v1360_v22, 1  ;;  %v2539_v22 = vld [vmem:[%s3324_s7] sm:$0xff]  }
0x11cd   :  { %1410 = vrot.lane.b32.xlu1 %v1409_v24, %s2684_s25  ;;  %v2540_v24 = vld [vmem:[%s3324_s7 + $0x8] sm:$0xff]  }
0x1238   :  { %v1364_v25 = vpop.permute.xlu0 %1363 }
0x1239   :  { %2306 = vmatmul.mubr.msk.bf16.vlgmr.msra.gmra.mrb[36].mxu1 %vm106_vm0, %v1364_v25 }
0x123a   :  { %2318 = vmatpush3.bf16.msra.mxu1 %v2856_v19  ;;  %2321 = vmatprep.mubr.msk.bf16.mxu1 %vm2691_vm3, %v2690_v9 }
0x123b   :  { %2319 = vmatprep.subr.bf16.mxu1 %v2690_v9 }
0x123e   :  { %2320 = vmatpush3.bf16.msra.mxu1 %v2862_v21 }
0x123f   :  { %v1411_v26 = vpop.permute.xlu1 %1410  ;;  %2333 = vmatprep.subr.bf16.mxu1 %v2690_v9 }
0x1240   :  { %2314 = vmatmul.mubr.msk.bf16.vlgmr.msra.gmra.mrb[36].mxu0 %vm106_vm0, %v1411_v26 }
0x1241   :  { %2322 = vmatmul.mubr.msk.bf16.vlgmr.msra.gmra.mrb[40].mxu1 %vm106_vm0, %v1411_v26  ;;  %2326 = vmatpush3.bf16.msra.mxu0 %v2889_v48 }
0x1242   :  { %2327 = vmatprep.subr.bf16.mxu0 %v2690_v9  ;;  %2334 = vmatpush3.bf16.msra.mxu1 %v2894_v49 }
0x1243   :  { %2329 = vmatprep.mubr.msk.bf16.mxu0 %vm2691_vm3, %v2690_v9  ;;  %2335 = vmatprep.subr.bf16.mxu1 %v2690_v9 }
0x1244   :  { %2337 = vmatprep.mubr.msk.bf16.mxu1 %vm2691_vm3, %v2690_v9 }
0x1245   :  { %2328 = vmatpush3.bf16.msra.mxu0 %v2900_v50 }
0x1246   :  { %2341 = vmatprep.subr.bf16.mxu0 %v2690_v9  ;;  %2336 = vmatpush3.bf16.msra.mxu1 %v2907_v52 }
0x1247   :  { %2349 = vmatprep.subr.bf16.mxu1 %v2690_v9 }
0x130c   :  { %v1402_v19 = vpop.f32.mrb[36].mxu1 }
0x130d   :  { %v2307_v21 = vpop.f32.mrb[37].mxu1 }
0x130e   :  { %v1405_v48 = vpop.f32.mrb[38].mxu1 }
0x130f   :  { %v2308_v49 = vpop.f32.mrb[39].mxu1 }
0x1313   :  { %v1449_v29 = vpop.f32.mrb[36].mxu0 }
0x1314   :  { %v1450_v31 = vadd.f32 %v1449_v29, %v1402_v19  ;;  %v2315_v32 = vpop.f32.mrb[37].mxu0  ;;  %v1519_v33 = vpop.f32.mrb[40].mxu1 }
0x1315   :  { %v1452_v34 = vpop.f32.mrb[38].mxu0  ;;  %v1526_v35 = vrot.slane %v1519_v33, 4  ;;  %v2323_v36 = vpop.f32.mrb[41].mxu1 }
0x1316   :  { %v1455_v38 = vadd.f32 %v2940_v63, %v1450_v31  ;;  %v2316_v50 = vpop.f32.mrb[39].mxu0  ;;  %v1522_v39 = vpop.f32.mrb[42].mxu1 }
0x1317   :  { %v1528_v40 = vadd.f32 %v1526_v35, %v2875_v28  ;;  %v2324_v52 = vpop.f32.mrb[43].mxu1 }
0x1318   :  { %2495 = vtanh.f32 %v1455_v38  ;;  %v2058_v43 = vmul.f32 -1.442695, %v1455_v38 }
0x1319   :  { %2497 = vtanh.f32 %v1528_v40  ;;  %v2060_v45 = vmul.f32 -1.442695, %v1528_v40 }
0x131a   :  { %2499 = vpow2.f32 %v2058_v43 }
0x131b   :  { %2501 = vpow2.f32 %v2060_v45 }
0x1322   :  { %v2496_v41 = vpop.eup %2495 }
0x1323   :  { %v2498_v42 = vpop.eup %2497  ;;  %1465 = vrot.lane.b32.xlu0 %v2496_v41, %s2687_s2 }
0x1324   :  { %1541 = vrot.lane.b32.xlu1 %v2498_v42, %s2687_s2  ;;  %v2500_v46 = vpop.eup %2499 }
0x1325   :  { %v2502_v47 = vpop.eup %2501  ;;  %v1459_v51 = vadd.f32 1.0, %v2500_v46 }
0x1326   :  { %v1532_v53 = vadd.f32 1.0, %v2502_v47 }
0x1327   :  { %2503 = vrcp.f32 %v1459_v51 }
0x1328   :  { %2505 = vrcp.f32 %v1532_v53 }
0x1331   :  { %v2504_v54 = vpop.eup %2503 }
0x1332   :  { %v2506_v56 = vpop.eup %2505  ;;  %v1463_v61 = vmul.f32 %v2504_v54, %v3121_v8 }
0x1333   :  { %v1539_v0 = vmul.f32 %v2506_v56, %v1537_v60 }
0x1395   :  { %v1466_v55 = vpop.permute.xlu0 %1465 }
0x1396   :  { %v1468_v57 = vmul.f32 %v2504_v54, %v1466_v55  ;;  %v1542_v58 = vpop.permute.xlu1 %1541 }
0x1397   :  { %v1544_v59 = vmul.f32 %v2506_v56, %v1542_v58 }
0x1398   :  { %1470 = vrot.lane.b32.xlu0 %v1468_v57, %s2684_s25 }
0x1399   :  { %1546 = vrot.lane.b32.xlu1 %v1544_v59, %s2684_s25 }
0x140a   :  { %v1471_v62 = vpop.permute.xlu0 %1470 }
0x140b   :  { %v3165_v1 = vadd.f32 %v1471_v62, %v1463_v61  ;;  %v1547_v2 = vpop.permute.xlu1 %1546 }
0x140c   :  { %v3167_v3 = vadd.f32 %v1547_v2, %v1539_v0 }
0x140d   :  { %2507 = vtanh.f32 %v3165_v1 }
0x140e   :  { %2509 = vtanh.f32 %v3167_v3  ;;  %v1733_v59 = vrot.slane %v3167_v3, 6 }
0x1417   :  { %v2508_v4 = vpop.eup %2507 }
0x1418   :  { %v2510_v5 = vpop.eup %2509  ;;  %1476 = vrot.lane.b32.xlu0 %v2508_v4, %s2687_s2 }
0x1419   :  { %1552 = vrot.lane.b32.xlu1 %v2510_v5, %s2687_s2 }
0x148a   :  { %v1477_v6 = vpop.permute.xlu0 %1476 }
0x148b   :  { %v3173_v7 = vmul.f32 %v2504_v54, %v1477_v6  ;;  %v1553_v8 = vpop.permute.xlu1 %1552 }
0x148c   :  { %v1555_v10 = vmul.f32 %v2506_v56, %v1553_v8 }
0x148d   :  { %v1557_v11 = vpack.c.bf16 %v3173_v7, %v3173_v7 }
0x148e   :  { %v1556_v30 = vpack.c.bf16 %v1555_v10, %v1555_v10 }
0x148f   :  { %1559 = vrot.lane.b32.xlu0 %v1557_v11, %s2684_s25 }
0x1490   :  { %v1605_v12 = vrot.slane %v1556_v30, 2 }
0x1492   :  { %1606 = vrot.lane.b32.xlu1 %v1605_v12, %s2684_s25 }
0x1501   :  { %v1560_v13 = vpop.permute.xlu0 %1559 }
0x1502   :  { %2330 = vmatmul.mubr.msk.bf16.vlgmr.msra.gmra.mrb[40].mxu0 %vm106_vm0, %v1560_v13 }
0x1503   :  { %2342 = vmatpush3.bf16.msra.mxu0 %v2535_v15  ;;  %2345 = vmatprep.mubr.msk.bf16.mxu0 %vm2691_vm3, %v2690_v9 }
0x1504   :  { %2343 = vmatprep.subr.bf16.mxu0 %v2690_v9  ;;  %v1607_v14 = vpop.permute.xlu1 %1606 }
0x1505   :  { %2338 = vmatmul.mubr.msk.bf16.vlgmr.msra.gmra.mrb[44].mxu1 %vm106_vm0, %v1607_v14 }
0x1506   :  { %2350 = vmatpush3.bf16.msra.mxu1 %v2536_v17  ;;  %2353 = vmatprep.mubr.msk.bf16.mxu1 %vm2691_vm3, %v2690_v9 }
0x1507   :  { %2344 = vmatpush3.bf16.msra.mxu0 %v2537_v18  ;;  %2351 = vmatprep.subr.bf16.mxu1 %v2690_v9 }
0x1508   :  { %2357 = vmatprep.subr.bf16.mxu0 %v2690_v9 }
0x150a   :  { %2346 = vmatmul.mubr.msk.bf16.vlgmr.msra.gmra.mrb[44].mxu0 %vm106_vm0, %v1607_v14  ;;  %2352 = vmatpush3.bf16.msra.mxu1 %v2538_v20 }
0x150b   :  { %2358 = vmatpush3.bf16.msra.mxu0 %v2539_v22  ;;  %2361 = vmatprep.mubr.msk.bf16.mxu0 %vm2691_vm3, %v2690_v9 }
0x150c   :  { %2359 = vmatprep.subr.bf16.mxu0 %v2690_v9  ;;  %2365 = vmatprep.subr.bf16.mxu1 %v2690_v9 }
0x150f   :  { %2360 = vmatpush3.bf16.msra.mxu0 %v2540_v24  ;;  %v2541_v24 = vld [vmem:[%s3326_s9] ss:$0 sm:$0xff]  ;;  %s2692_s9 = smov 96  }
0x15d5   :  { %v1598_v25 = vpop.f32.mrb[40].mxu0 }
0x15d6   :  { %v2331_v26 = vpop.f32.mrb[41].mxu0 }
0x15d7   :  { %v1601_v19 = vpop.f32.mrb[42].mxu0 }
0x15d8   :  { %v2332_v21 = vpop.f32.mrb[43].mxu0  ;;  %v1645_v48 = vpop.f32.mrb[44].mxu1 }
0x15d9   :  { %v1646_v49 = vadd.f32 %v1645_v48, %v1598_v25  ;;  %v2339_v29 = vpop.f32.mrb[45].mxu1 }
0x15da   :  { %v1648_v31 = vpop.f32.mrb[46].mxu1 }
0x15db   :  { %v1651_v32 = vadd.f32 %v2940_v63, %v1646_v49  ;;  %v2340_v33 = vpop.f32.mrb[47].mxu1 }
0x15dd   :  { %2511 = vtanh.f32 %v1651_v32  ;;  %v1715_v34 = vpop.f32.mrb[44].mxu0  ;;  %v2063_v41 = vmul.f32 -1.442695, %v1651_v32 }
0x15de   :  { %v1722_v35 = vrot.slane %v1715_v34, 2  ;;  %v2347_v36 = vpop.f32.mrb[45].mxu0 }
0x15df   :  { %v1718_v38 = vpop.f32.mrb[46].mxu0 }
0x15e0   :  { %v1724_v50 = vadd.f32 %v1722_v35, %v2875_v28  ;;  %v2348_v39 = vpop.f32.mrb[47].mxu0 }
0x15e2   :  { %2513 = vtanh.f32 %v1724_v50  ;;  %v2065_v42 = vmul.f32 -1.442695, %v1724_v50 }
0x15e3   :  { %2515 = vpow2.f32 %v2063_v41 }
0x15e4   :  { %2517 = vpow2.f32 %v2065_v42 }
0x15e7   :  { %v2512_v40 = vpop.eup %2511 }
0x15e8   :  { %1661 = vrot.lane.b32.xlu1 %v2512_v40, %s2687_s2  ;;  %v2405_v40 = vld [vmem:[%s3327_s10] sm:$0xff]  }
0x15ec   :  { %v2514_v52 = vpop.eup %2513 }
0x15ed   :  { %1737 = vrot.lane.b32.xlu0 %v2514_v52, %s2687_s2  ;;  %v2516_v63 = vpop.eup %2515 }
0x15ee   :  { %v1655_v43 = vadd.f32 1.0, %v2516_v63  ;;  %v2518_v45 = vpop.eup %2517 }
0x15ef   :  { %v1728_v46 = vadd.f32 1.0, %v2518_v45 }
0x15f0   :  { %2519 = vrcp.f32 %v1655_v43 }
0x15f1   :  { %2521 = vrcp.f32 %v1728_v46 }
0x15fa   :  { %v2520_v47 = vpop.eup %2519 }
0x15fb   :  { %v2522_v53 = vpop.eup %2521  ;;  %v1659_v56 = vmul.f32 %v2520_v47, %v3165_v1 }
0x15fc   :  { %v1735_v60 = vmul.f32 %v2522_v53, %v1733_v59 }
0x165a   :  { %v1662_v28 = vpop.permute.xlu1 %1661 }
0x165b   :  { %v1664_v51 = vmul.f32 %v2520_v47, %v1662_v28 }
0x165d   :  { %1666 = vrot.lane.b32.xlu1 %v1664_v51, %s2684_s25 }
0x165f   :  { %v1738_v54 = vpop.permute.xlu0 %1737 }
0x1660   :  { %v1740_v55 = vmul.f32 %v2522_v53, %v1738_v54 }
0x1662   :  { %1742 = vrot.lane.b32.xlu0 %v1740_v55, %s2684_s25 }
0x16cf   :  { %v1667_v57 = vpop.permute.xlu1 %1666 }
0x16d0   :  { %v1669_v58 = vadd.f32 %v1667_v57, %v1659_v56 }
0x16d2   :  { %2523 = vtanh.f32 %v1669_v58 }
0x16d4   :  { %v1743_v61 = vpop.permute.xlu0 %1742 }
0x16d5   :  { %v3219_v62 = vadd.f32 %v1743_v61, %v1735_v60 }
0x16d7   :  { %2525 = vtanh.f32 %v3219_v62 }
0x16dc   :  { %v2524_v0 = vpop.eup %2523 }
0x16dd   :  { %1672 = vrot.lane.b32.xlu1 %v2524_v0, %s2687_s2 }
0x16e1   :  { %v2526_v2 = vpop.eup %2525 }
0x16e2   :  { %1748 = vrot.lane.b32.xlu0 %v2526_v2, %s2687_s2 }
0x174f   :  { %v1673_v4 = vpop.permute.xlu1 %1672 }
0x1750   :  { %v1675_v5 = vmul.f32 %v2520_v47, %v1673_v4 }
0x1752   :  { %v1753_v1 = vpack.c.bf16 %v1675_v5, %v1675_v5 }
0x1754   :  { %v1749_v6 = vpop.permute.xlu0 %1748  ;;  %1755 = vrot.lane.b32.xlu0 %v1753_v1, %s2684_s25 }
0x1755   :  { %v1751_v3 = vmul.f32 %v2522_v53, %v1749_v6 }
0x1757   :  { %v1752_v8 = vpack.c.bf16 %v1751_v3, %v1751_v3 }
0x1759   :  { %v1801_v10 = vrot.slane %v1752_v8, 3 }
0x175b   :  { %1802 = vrot.lane.b32.xlu1 %v1801_v10, %s2684_s25 }
0x17c6   :  { %v1756_v11 = vpop.permute.xlu0 %1755 }
0x17c7   :  { %2354 = vmatmul.mubr.msk.bf16.vlgmr.msra.gmra.mrb[48].mxu1 %vm106_vm0, %v1756_v11 }
0x17c8   :  { %2369 = vmatprep.mubr.msk.bf16.mxu1 %vm2691_vm3, %v2690_v9  ;;  %2366 = vmatpush3.bf16.msra.mxu1 %v2405_v40 }
0x17c9   :  { %2367 = vmatprep.subr.bf16.mxu1 %v2690_v9 }
0x17cd   :  { %v1803_v30 = vpop.permute.xlu1 %1802 }
0x17ce   :  { %2362 = vmatmul.mubr.msk.bf16.vlgmr.msra.gmra.mrb[48].mxu0 %vm106_vm0, %v1803_v30 }
0x189a   :  { %v1794_v12 = vpop.f32.mrb[48].mxu1 }
0x189b   :  { %v2355_v13 = vpop.f32.mrb[49].mxu1 }
0x189c   :  { %v1797_v15 = vpop.f32.mrb[50].mxu1 }
0x189d   :  { %v2356_v14 = vpop.f32.mrb[51].mxu1 }
0x18a1   :  { %v1841_v17 = vpop.f32.mrb[48].mxu0 }
0x18a2   :  { %v1842_v18 = vadd.f32 %v1841_v17, %v1794_v12  ;;  %v2363_v20 = vpop.f32.mrb[49].mxu0 }
0x18a3   :  { %v1844_v22 = vpop.f32.mrb[50].mxu0 }
0x18a4   :  { %v1847_v25 = vadd.f32 %v2541_v24, %v1842_v18  ;;  %v2364_v26 = vpop.f32.mrb[51].mxu0 }
0x18a6   :  { %2527 = vtanh.f32 %v1847_v25  ;;  %v2068_v21 = vmul.f32 -1.442695, %v1847_v25 }
0x18a8   :  { %2529 = vpow2.f32 %v2068_v21 }
0x18b0   :  { %v2528_v19 = vpop.eup %2527 }
0x18b1   :  { %1857 = vrot.lane.b32.xlu0 %v2528_v19, %s2687_s2 }
0x18b2   :  { %v2530_v48 = vpop.eup %2529 }
0x18b3   :  { %v1851_v49 = vadd.f32 1.0, %v2530_v48 }
0x18b5   :  { %2531 = vrcp.f32 %v1851_v49 }
0x18bf   :  { %v2532_v29 = vpop.eup %2531 }
0x18c0   :  { %v1855_v33 = vmul.f32 %v2532_v29, %v1669_v58 }
0x1923   :  { %v1858_v31 = vpop.permute.xlu0 %1857 }
0x1924   :  { %v1860_v32 = vmul.f32 %v2532_v29, %v1858_v31 }
0x1926   :  { %1862 = vrot.lane.b32.xlu1 %v1860_v32, %s2684_s25 }
0x192a   :  { %504 = vrot.lane.b32.xlu1 %v2958_v44, %s2684_s25 }
0x192e   :  { %897 = vrot.lane.b32.xlu1 %v3044_v27, %s2684_s25 }
0x1932   :  { %1285 = vrot.lane.b32.xlu1 %v3130_v16, %s2684_s25 }
0x1936   :  { %1677 = vrot.lane.b32.xlu1 %v1675_v5, %s2684_s25 }
0x193a   :  { %1878 = vrot.lane.b32.xlu1 %v1751_v3, %s2684_s25 }
0x1998   :  { %v1863_v34 = vpop.permute.xlu1 %1862 }
0x1999   :  { %v1865_v35 = vadd.f32 %v1863_v34, %v1855_v33 }
0x199b   :  { %2533 = vtanh.f32 %v1865_v35  ;;  %1891 = vrot.lane.b32.xlu1 %v1865_v35, %s2692_s9 }
0x199c   :  { %v505_v36 = vpop.permute.xlu1 %504 }
0x199d   :  { %508 = vst.msk [vmem:[#allocation2] sm:$0x3] %vm507_vm5, %v505_v36 }
0x19a0   :  { %v898_v44 = vpop.permute.xlu1 %897 }
0x19a1   :  { %900 = vst.msk [vmem:[#allocation2 + $0x4] sm:$0x3] %vm507_vm5, %v898_v44 }
0x19a4   :  { %v1286_v27 = vpop.permute.xlu1 %1285 }
0x19a5   :  { %v2534_v38 = vpop.eup %2533  ;;  %1288 = vst.msk [vmem:[#allocation2 + $0x8] sm:$0x3] %vm507_vm5, %v1286_v27 }
0x19a6   :  { %1868 = vrot.lane.b32.xlu0 %v2534_v38, %s2687_s2 }
0x19a8   :  { %v1678_v16 = vpop.permute.xlu1 %1677 }
0x19a9   :  { %1680 = vst.msk [vmem:[#allocation2 + $0xc] sm:$0x3] %vm507_vm5, %v1678_v16 }
0x19aa   :  { %701 = vrot.lane.b32.xlu0 %v3001_v37, %s2684_s25  ;;  %v2406_v37 = vld [vmem:[%s3327_s10 + $0x8] sm:$0xff]   ;;  %s2693_s10 = smov [#allocation10]  }
0x19ab   :  { %2368 = vmatpush3.bf16.msra.mxu1 %v2406_v37  ;;  %s1985_s28 = sshll.u32 %s2693_s10, 4  ;;  %s1986_s28 = int_to_ptr.vmem [resolvable:$true] %s1985_s28 }
0x19ac   :  { %v1879_v50 = vpop.permute.xlu1 %1878  ;;  %s2608_s29 = scalar_lea.vmem %s1986_s28, 64  ;;  %p2613_p11 = scmp.lt.s32.totalorder %s1986_s28, %s1986_s28 }
0x19ad   :  { %1882 = vst.msk [vmem:[#allocation10 - $0x6] sm:$0xc0] %vm1881_vm6, %v1879_v50  ;;  %p2609_p10 = scmp.ne.s32.totalorder %s1986_s28, %s2608_s29  ;;  %p2614_p12 = scmp.lt.s32.totalorder %s2608_s29, %s2608_s29 }
0x19ae   :  { %1093 = vrot.lane.b32.xlu0 %v3087_v23, %s2684_s25 }
0x19af   :  { %p2615_p13 = por %p2614_p12, %p2613_p11 }
0x19b1   :  { %p2616_p0 = pnand %p2615_p13, %p2609_p10 }
0x19b2   :  { %1481 = vrot.lane.b32.xlu0 %v3173_v7, %s2684_s25 }
0x1a0d   :  { %v1892_v39 = vpop.permute.xlu1 %1891 }
0x1a0e   :  { %1895 = vst.msk [vmem:[#allocation12 + $0x2] sm:$0x3] %vm507_vm5, %v1892_v39 }
0x1a18   :  { %v1869_v52 = vpop.permute.xlu0 %1868 }
0x1a19   :  { %v1871_v23 = vmul.f32 %v2532_v29, %v1869_v52 }
0x1a1b   :  { %1873 = vrot.lane.b32.xlu0 %v1871_v23, %s2684_s25 }
0x1a1c   :  { %v702_v7 = vpop.permute.xlu0 %701 }
0x1a1d   :  { %704 = vst.msk [vmem:[#allocation2 + $0x2] sm:$0x3] %vm507_vm5, %v702_v7 }
0x1a1f   :  { %1884 = vrot.lane.b32.xlu0 %v3219_v62, %s2692_s9 }
0x1a20   :  { %v1094_v41 = vpop.permute.xlu0 %1093 }
0x1a21   :  { %1096 = vst.msk [vmem:[#allocation2 + $0x6] sm:$0x3] %vm507_vm5, %v1094_v41 }
0x1a24   :  { %v1482_v42 = vpop.permute.xlu0 %1481 }
0x1a25   :  { %1484 = vst.msk [vmem:[#allocation2 + $0xa] sm:$0x3] %vm507_vm5, %v1482_v42 }
0x1a28   :  { %v1896_v43 = vld [vmem:[#allocation2] sm:$0xff] }
0x1a8d   :  { %v1874_v9 = vpop.permute.xlu0 %1873 }
0x1a8e   :  { %1876 = vst.msk [vmem:[#allocation2 + $0xe] sm:$0x3] %vm507_vm5, %v1874_v9  ;;  %1889 = vst.msk [vmem:[#allocation10 + $0x2] sm:$0x3] %vm507_vm5, %v1874_v9 }
0x1a91   :  { %v1885_v63 = vpop.permute.xlu0 %1884 }
0x1a92   :  { %1887 = vst.msk [vmem:[#allocation12 - $0x6] sm:$0xc0] %vm1881_vm6, %v1885_v63 }
0x1a95   :  { %v1897_v45 = vld [vmem:[#allocation2 + $0x8] sm:$0xff] }
0x1a96   :  { %v1898_v46 = vpack.c.bf16 %v1897_v45, %v1896_v43 }
0x1a98   :  { %2370 = vmatmul.mubr.msk.bf16.vlgmr.msra.gmra.mrb[52].mxu1 %vm106_vm0, %v1898_v46 }
0x1a99   :  { %2619 = shalt.err (!%p2616_p0)
}
0x1a9a   :  { %s2620_s15 = scalar_lea.hbm %s3330_s13, 64 }
0x1a9b   :  { %p2621_p1 = scmp.ne.s32.totalorder %s3330_s13, %s2620_s15  ;;  %p2624_p2 = scmp.lt.u32.totalorder %s2620_s15, %s3330_s13 }
0x1a9d   :  { %p2626_p3 = pnand %p2624_p2, %p2621_p1 }
0x1a9f   :  { %2629 = shalt.err (!%p2626_p3)
}
0x1aa0   :  { %1991 = dma.vmem_to_hbm [thread:$0]  %s1986_s28, 64, %s3330_s13, [#allocation11], %s2684_s25, %s2684_s25, %s2685_s26  }
0x1aa1   :  { %s2694_s16 = smov [#allocation12]  }
0x1aa2   :  { %s1997_s21 = sshll.u32 %s2694_s16, 4  ;;  %s1998_s21 = int_to_ptr.vmem [resolvable:$true] %s1997_s21 }
0x1aa3   :  { %s2630_s22 = scalar_lea.vmem %s1998_s21, 64  ;;  %p2635_p5 = scmp.lt.s32.totalorder %s1998_s21, %s1998_s21 }
0x1aa4   :  { %p2631_p4 = scmp.ne.s32.totalorder %s1998_s21, %s2630_s22  ;;  %p2636_p6 = scmp.lt.s32.totalorder %s2630_s22, %s2630_s22 }
0x1aa6   :  { %p2637_p7 = por %p2636_p6, %p2635_p5 }
0x1aa8   :  { %p2638_p8 = pnand %p2637_p7, %p2631_p4 }
0x1aaa   :  { %2641 = shalt.err (!%p2638_p8)
}
0x1aab   :  { %s2642_s3 = scalar_lea.hbm %s3331_s14, 64 }
0x1aac   :  { %p2643_p9 = scmp.ne.s32.totalorder %s3331_s14, %s2642_s3  ;;  %p2646_p10 = scmp.lt.u32.totalorder %s2642_s3, %s3331_s14 }
0x1aae   :  { %p2648_p11 = pnand %p2646_p10, %p2643_p9 }
0x1ab0   :  { %2651 = shalt.err (!%p2648_p11)
}
0x1ab1   :  { %2003 = dma.vmem_to_hbm [thread:$0]  %s1998_s21, 64, %s3331_s14, [#allocation11], %s2684_s25, %s2684_s25, %s2685_s26  }
0x1ab2   :  { %v2069_v47 = vld [vmem:[%s3328_s11] ss:$0 sm:$0xff]  ;;  %s2695_s10 = smov [#allocation9]  }
0x1ab3   :  { %s1973_s28 = sshll.u32 %s2695_s10, 4  ;;  %s1974_s28 = int_to_ptr.vmem [resolvable:$true] %s1973_s28 }
0x1ab4   :  { %s2652_s29 = scalar_lea.vmem %s1974_s28, 256  ;;  %p2657_p13 = scmp.lt.s32.totalorder %s1974_s28, %s1974_s28 }
0x1ab5   :  { %p2653_p12 = scmp.ne.s32.totalorder %s1974_s28, %s2652_s29  ;;  %p2658_p0 = scmp.lt.s32.totalorder %s2652_s29, %s2652_s29 }
0x1ab7   :  { %p2659_p1 = por %p2658_p0, %p2657_p13 }
0x1ab9   :  { %p2660_p2 = pnand %p2659_p1, %p2653_p12 }
0x1b6b   :  { %v1959_v28 = vpop.f32.mrb[52].mxu1 }
0x1b6c   :  { %v1960_v51 = vadd.f32 %v2069_v47, %v1959_v28  ;;  %v2371_v53 = vpop.f32.mrb[53].mxu1 }
0x1b6d   :  { %v1962_v54 = vpop.f32.mrb[54].mxu1 }
0x1b6e   :  { %1966 = vst [vmem:[#allocation9] sm:$0xff] %v1960_v51  ;;  %v1963_v55 = vadd.f32 %v2069_v47, %v1962_v54  ;;  %v2372_v56 = vpop.f32.mrb[55].mxu1 }
0x1b70   :  { %1967 = vst [vmem:[#allocation9 + $0x8] sm:$0xff] %v1963_v55 }
0x1b71   :  { %2663 = shalt.err (!%p2660_p2)
}
0x1b72   :  { %s2664_s25 = scalar_lea.hbm %s3329_s12, 256 }
0x1b73   :  { %p2665_p3 = scmp.ne.s32.totalorder %s3329_s12, %s2664_s25  ;;  %p2668_p4 = scmp.lt.u32.totalorder %s2664_s25, %s3329_s12 }
0x1b75   :  { %p2670_p5 = pnand %p2668_p4, %p2665_p3 }
0x1b77   :  { %2673 = shalt.err (!%p2670_p5)
}
0x1b78   :  { %s2696_s17 = smov 128   ;;  %s2697_s18 = smov 8  }
0x1b79   :  { %1979 = dma.vmem_to_hbm [thread:$0]  %s1974_s28, 256, %s3329_s12, [#allocation5], %s2696_s17, %s2696_s17, %s2697_s18  }
0x1b7a   :  { %2678 = dma.done.wait [#allocation5], 256  }
0x1b7b   :  { %2679 = vsyncadd [#allocation5], 4294967040 }
0x1b7c   :  { %2680 = dma.done.wait [#allocation11], 128  }
0x1b7d   :  { %2681 = vsyncadd [#allocation11], 4294967168 }
0x1b7e   :  { %2013 = vsyncpa [#allocation4], 1 }
0x1b7f   :  { %2014 = vsyncpa [#allocation7], 1 }
0x1b80   :  { %2015 = vsyncpa [#allocation5], 1 }
0x1b81   :  { %2016 = vsyncpa [#allocation11], 1 }

</bundles_post_ra>
